<compile_context>
chip_gen: v7x
topology: tpu7x:2x2x1
jax: 0.10.0
libtpu: 0.0.40
codegen_flags: <defaults>
</compile_context>

<pallas_src>
import math

import jax
import jax.numpy as jnp
from jax.experimental import pallas as pl
from jax.experimental.pallas import tpu as pltpu

LATDIM = 128
HIDDEN = LATDIM + 512          # 640
FF_DIM = LATDIM * 4            # 512
LN_EPS = 1e-5                  # nn.LayerNorm default
B, S = 2, 8                    # small example shapes


def _gelu_exact(x):
    # torch nn.GELU() default = exact erf formulation
    return 0.5 * x * (1.0 + jax.lax.erf(x * (1.0 / math.sqrt(2.0))))


def _layernorm(x, gamma, beta):
    mu = jnp.mean(x, axis=-1, keepdims=True)
    var = jnp.mean(jnp.square(x - mu), axis=-1, keepdims=True)
    return (x - mu) * jax.lax.rsqrt(var + LN_EPS) * gamma + beta


def intermediate_kernel(x_ref, w1_ref, w2_ref, p_ref, out_ref):
    # bf16 operands straight into the MXU, f32 accumulation.
    x = x_ref[...].astype(jnp.bfloat16)          # (T, H)
    w1 = w1_ref[...]                             # (H, FF)  bf16, resident across grid
    w2 = w2_ref[...]                             # (FF, H)  bf16, resident across grid
    p = p_ref[...]                               # (4, H)   f32 packed param slab
    b1 = p[0:1, :FF_DIM]                         # (1, FF)
    b2 = p[1:2, :]                               # (1, H)
    gamma = p[2:3, :]                            # (1, H)
    beta = p[3:4, :]                             # (1, H)

    h = jnp.dot(x, w1, preferred_element_type=jnp.float32) + b1
    h = _gelu_exact(h)
    y = jnp.dot(h.astype(jnp.bfloat16), w2, preferred_element_type=jnp.float32) + b2
    # TODO(synk): nn.Dropout(args.hidden_dropout_prob) treated as eval-mode identity.
    out_ref[...] = _layernorm(y, gamma, beta).astype(out_ref.dtype)


def intermediate_layer(x, params):
    """x: (..., HIDDEN) f32. Rows are tiled; weights stay VMEM-resident."""
    w1, w2, pslab = params
    orig_shape = x.shape
    x2 = x.reshape(-1, HIDDEN)
    n = x2.shape[0]

    # Row tile: multiple of 8 (sublane), capped at 256 rows per grid step.
    tile = min(256, max(8, ((n + 7) // 8) * 8))
    n_pad = ((n + tile - 1) // tile) * tile
    if n_pad != n:
        x2 = jnp.pad(x2, ((0, n_pad - n), (0, 0)))
    grid = (n_pad // tile,)

    cost = pl.CostEstimate(
        flops=2 * n_pad * HIDDEN * FF_DIM * 2,          # two matmuls
        transcendentals=n_pad * FF_DIM,                 # erf in GELU
        bytes_accessed=(w1.size + w2.size) * 2          # bf16 weights
        + pslab.size * 4
        + 2 * n_pad * HIDDEN * 4,                       # x in + out
    )

    out = pl.pallas_call(
        intermediate_kernel,
        out_shape=jax.ShapeDtypeStruct((n_pad, HIDDEN), jnp.float32),
        grid=grid,
        in_specs=[
            pl.BlockSpec((tile, HIDDEN), lambda i: (i, 0)),      # activations, tiled
            pl.BlockSpec((HIDDEN, FF_DIM), lambda i: (0, 0)),    # w1 resident
            pl.BlockSpec((FF_DIM, HIDDEN), lambda i: (0, 0)),    # w2 resident
            pl.BlockSpec((4, HIDDEN), lambda i: (0, 0)),         # packed params resident
        ],
        out_specs=pl.BlockSpec((tile, HIDDEN), lambda i: (i, 0)),
        compiler_params=pltpu.CompilerParams(
            dimension_semantics=("parallel",)),
        cost_estimate=cost,
    )(x2, w1, w2, pslab)

    if n_pad != n:
        out = out[:n]
    return out.reshape(orig_shape)


# ---- deterministic parameter init --------------------------------------------
def make_params(key):
    k1, k2, k3, k4 = jax.random.split(key, 4)

    def xavier(k, fan_in, fan_out):
        limit = math.sqrt(6.0 / (fan_in + fan_out))
        # stored already transposed: (in, out)
        return jax.random.uniform(k, (fan_in, fan_out), jnp.float32, -limit, limit)

    # weights kept in bf16: halves HBM weight traffic and feeds the MXU directly
    w1 = xavier(k1, HIDDEN, FF_DIM).astype(jnp.bfloat16)
    w2 = xavier(k2, FF_DIM, HIDDEN).astype(jnp.bfloat16)
    b1 = jax.random.uniform(k3, (FF_DIM,), jnp.float32, -0.05, 0.05)
    b2 = jax.random.uniform(k4, (HIDDEN,), jnp.float32, -0.05, 0.05)
    gamma = jnp.ones((HIDDEN,), jnp.float32)
    beta = jnp.zeros((HIDDEN,), jnp.float32)

    # pack the four per-feature vectors into one (4, HIDDEN) slab:
    #   row 0: b1 (zero-padded 512 -> 640), row 1: b2, row 2: gamma, row 3: beta
    row0 = jnp.zeros((HIDDEN,), jnp.float32).at[:FF_DIM].set(b1)
    pslab = jnp.stack([row0, b2, gamma, beta], axis=0)
    return w1, w2, pslab


# ---- pure-JAX reference (same bf16-operand / f32-accumulate path) -------------
def reference(x, params):
    w1, w2, pslab = params
    b1 = pslab[0, :FF_DIM]
    b2 = pslab[1]
    gamma = pslab[2]
    beta = pslab[3]
    x2 = x.reshape(-1, HIDDEN).astype(jnp.bfloat16)
    h = jnp.dot(x2, w1, preferred_element_type=jnp.float32) + b1
    h = _gelu_exact(h)
    y = jnp.dot(h.astype(jnp.bfloat16), w2, preferred_element_type=jnp.float32) + b2
    return _layernorm(y, gamma, beta).reshape(x.shape)


if __name__ == "__main__":
    key = jax.random.PRNGKey(0)
    kx, kp = jax.random.split(key)
    x = jax.random.normal(kx, (B, S, HIDDEN), jnp.float32)
    params = make_params(kp)

    out = jax.block_until_ready(intermediate_layer(x, params))
    ref = reference(x, params)

    assert out.shape == (B, S, HIDDEN)
    assert jnp.allclose(out, ref, atol=2e-3, rtol=2e-3), "mismatch vs reference"

    print("KERNEL_OK")
</pallas_src>

<mosaic_0001>
module attributes {stable_mosaic.version = 11 : i64} {
  func.func @intermediate_kernel(%arg0: i32, %arg1: memref<16x640xf32, #tpu.memory_space<vmem>>, %arg2: memref<640x512xbf16, #tpu.memory_space<vmem>>, %arg3: memref<512x640xbf16, #tpu.memory_space<vmem>>, %arg4: memref<4x640xf32, #tpu.memory_space<vmem>>, %arg5: memref<16x640xf32, #tpu.memory_space<vmem>>) attributes {dimension_semantics = [#tpu.dimension_semantics<parallel>], iteration_bounds = array<i64: 1>, scalar_prefetch = 0 : i64, scratch_operands = 0 : i64, tpu.core_type = #tpu.core_type<tc>, window_params = [{transform_indices = @transform_0, window_bounds = array<i64: 16, 640>}, {pipeline_mode = #tpu.pipeline_mode<synchronous>, transform_indices = @transform_1, window_bounds = array<i64: 640, 512>}, {pipeline_mode = #tpu.pipeline_mode<synchronous>, transform_indices = @transform_2, window_bounds = array<i64: 512, 640>}, {pipeline_mode = #tpu.pipeline_mode<synchronous>, transform_indices = @transform_3, window_bounds = array<i64: 4, 640>}, {transform_indices = @transform_4, window_bounds = array<i64: 16, 640>}]} {
    %c0 = arith.constant 0 : index
    %c0_0 = arith.constant 0 : index
    %0 = vector.load %arg1[%c0, %c0_0] : memref<16x640xf32, #tpu.memory_space<vmem>>, vector<16x640xf32>
    %1 = arith.truncf %0 : vector<16x640xf32> to vector<16x640xbf16>
    %c0_1 = arith.constant 0 : index
    %c0_2 = arith.constant 0 : index
    %2 = vector.load %arg2[%c0_1, %c0_2] : memref<640x512xbf16, #tpu.memory_space<vmem>>, vector<640x512xbf16>
    %c0_3 = arith.constant 0 : index
    %c0_4 = arith.constant 0 : index
    %3 = vector.load %arg3[%c0_3, %c0_4] : memref<512x640xbf16, #tpu.memory_space<vmem>>, vector<512x640xbf16>
    %c0_5 = arith.constant 0 : index
    %c0_6 = arith.constant 0 : index
    %4 = vector.load %arg4[%c0_5, %c0_6] : memref<4x640xf32, #tpu.memory_space<vmem>>, vector<4x640xf32>
    %5 = vector.extract_strided_slice %4 {offsets = [0, 0], sizes = [1, 512], strides = [1, 1]} : vector<4x640xf32> to vector<1x512xf32>
    %6 = vector.extract_strided_slice %4 {offsets = [1, 0], sizes = [1, 640], strides = [1, 1]} : vector<4x640xf32> to vector<1x640xf32>
    %7 = vector.extract_strided_slice %4 {offsets = [2, 0], sizes = [1, 640], strides = [1, 1]} : vector<4x640xf32> to vector<1x640xf32>
    %8 = vector.extract_strided_slice %4 {offsets = [3, 0], sizes = [1, 640], strides = [1, 1]} : vector<4x640xf32> to vector<1x640xf32>
    %cst = arith.constant dense<0.000000e+00> : vector<16x512xf32>
    %9 = tpu.matmul %1, %2, %cst {dimension_numbers = #tpu.dot_dimension_numbers<[1], [0], [0], [1], [0, 0, 1, 1], [], []>} : vector<16x640xbf16>, vector<640x512xbf16>, vector<16x512xf32> -> vector<16x512xf32>
    %10 = vector.broadcast %5 : vector<1x512xf32> to vector<16x512xf32>
    %11 = arith.addf %9, %10 : vector<16x512xf32>
    %cst_7 = arith.constant 5.000000e-01 : f32
    %12 = vector.broadcast %cst_7 : f32 to vector<16x512xf32>
    %13 = arith.mulf %12, %11 : vector<16x512xf32>
    %cst_8 = arith.constant 0.707106769 : f32
    %14 = vector.broadcast %cst_8 : f32 to vector<16x512xf32>
    %15 = arith.mulf %11, %14 : vector<16x512xf32>
    %16 = math.erf %15 : vector<16x512xf32>
    %cst_9 = arith.constant 1.000000e+00 : f32
    %17 = vector.broadcast %cst_9 : f32 to vector<16x512xf32>
    %18 = arith.addf %17, %16 : vector<16x512xf32>
    %19 = arith.mulf %13, %18 : vector<16x512xf32>
    %20 = arith.truncf %19 : vector<16x512xf32> to vector<16x512xbf16>
    %cst_10 = arith.constant dense<0.000000e+00> : vector<16x640xf32>
    %21 = tpu.matmul %20, %3, %cst_10 {dimension_numbers = #tpu.dot_dimension_numbers<[1], [0], [0], [1], [0, 0, 1, 1], [], []>} : vector<16x512xbf16>, vector<512x640xbf16>, vector<16x640xf32> -> vector<16x640xf32>
    %22 = vector.broadcast %6 : vector<1x640xf32> to vector<16x640xf32>
    %23 = arith.addf %21, %22 : vector<16x640xf32>
    %cst_11 = arith.constant dense<0.000000e+00> : vector<16xf32>
    %24 = vector.multi_reduction <add>, %23, %cst_11 [1] : vector<16x640xf32> to vector<16xf32>
    %25 = vector.shape_cast %24 : vector<16xf32> to vector<16x1xf32>
    %cst_12 = arith.constant 6.400000e+02 : f32
    %26 = vector.broadcast %cst_12 : f32 to vector<16x1xf32>
    %27 = arith.divf %25, %26 : vector<16x1xf32>
    %28 = vector.broadcast %27 : vector<16x1xf32> to vector<16x640xf32>
    %29 = arith.subf %23, %28 : vector<16x640xf32>
    %30 = arith.mulf %29, %29 : vector<16x640xf32>
    %cst_13 = arith.constant dense<0.000000e+00> : vector<16xf32>
    %31 = vector.multi_reduction <add>, %30, %cst_13 [1] : vector<16x640xf32> to vector<16xf32>
    %32 = vector.shape_cast %31 : vector<16xf32> to vector<16x1xf32>
    %cst_14 = arith.constant 6.400000e+02 : f32
    %33 = vector.broadcast %cst_14 : f32 to vector<16x1xf32>
    %34 = arith.divf %32, %33 : vector<16x1xf32>
    %35 = vector.broadcast %27 : vector<16x1xf32> to vector<16x640xf32>
    %36 = arith.subf %23, %35 : vector<16x640xf32>
    %cst_15 = arith.constant 9.99999974E-6 : f32
    %37 = vector.broadcast %cst_15 : f32 to vector<16x1xf32>
    %38 = arith.addf %34, %37 : vector<16x1xf32>
    %39 = math.rsqrt %38 : vector<16x1xf32>
    %40 = vector.broadcast %39 : vector<16x1xf32> to vector<16x640xf32>
    %41 = arith.mulf %36, %40 : vector<16x640xf32>
    %42 = vector.broadcast %7 : vector<1x640xf32> to vector<16x640xf32>
    %43 = arith.mulf %41, %42 : vector<16x640xf32>
    %44 = vector.broadcast %8 : vector<1x640xf32> to vector<16x640xf32>
    %45 = arith.addf %43, %44 : vector<16x640xf32>
    %c0_16 = arith.constant 0 : index
    %c0_17 = arith.constant 0 : index
    %46 = vector.load %arg5[%c0_16, %c0_17] : memref<16x640xf32, #tpu.memory_space<vmem>>, vector<16x640xf32>
    tpu.vector_store %arg5[%c0_16, %c0_17], %45 {strides = array<i32>} : memref<16x640xf32, #tpu.memory_space<vmem>>, vector<16x640xf32>,
    return
  }
  func.func @transform_0(%arg0: i32) -> (i32, i32) {
    %c0_i32 = arith.constant 0 : i32
    %c0_i32_0 = arith.constant 0 : i32
    return %arg0, %c0_i32 : i32, i32
  }
  func.func @transform_1(%arg0: i32) -> (i32, i32) {
    %c0_i32 = arith.constant 0 : i32
    %c0_i32_0 = arith.constant 0 : i32
    %c0_i32_1 = arith.constant 0 : i32
    return %c0_i32, %c0_i32_0 : i32, i32
  }
  func.func @transform_2(%arg0: i32) -> (i32, i32) {
    %c0_i32 = arith.constant 0 : i32
    %c0_i32_0 = arith.constant 0 : i32
    %c0_i32_1 = arith.constant 0 : i32
    return %c0_i32, %c0_i32_0 : i32, i32
  }
  func.func @transform_3(%arg0: i32) -> (i32, i32) {
    %c0_i32 = arith.constant 0 : i32
    %c0_i32_0 = arith.constant 0 : i32
    %c0_i32_1 = arith.constant 0 : i32
    return %c0_i32, %c0_i32_0 : i32, i32
  }
  func.func @transform_4(%arg0: i32) -> (i32, i32) {
    %c0_i32 = arith.constant 0 : i32
    %c0_i32_0 = arith.constant 0 : i32
    return %arg0, %c0_i32 : i32, i32
  }
}

</mosaic_0001>

<bundles_post_ra>
// kernel: tpu_custom_call.1
= control target key start
LH: loop header
LB: loop body
LE: loop exit
PB: predicated region body
PF: predicated region fallthrough
CT: control target
= control target key end

     0   :  { %9 = vsyncpa [#allocation3], 0  ;;  %s4112_s0 = inlined_call_operand.hbm [shape: f32[16,640], index: 0, kind: input, shape index: {}]   ;;  %s4113_s1 = inlined_call_operand.hbm [shape: bf16[640,512], index: 1, kind: input, shape index: {}]   ;;  %s4114_s2 = inlined_call_operand.hbm [shape: bf16[512,640], index: 2, kind: input, shape index: {}]   ;;  %s4115_s3 = inlined_call_operand.hbm [shape: f32[4,640], index: 3, kind: input, shape index: {}]   ;;  %s4116_s4 = inlined_call_operand.hbm [shape: f32[16,640], index: 4, kind: output, shape index: {}]  }
   0x1   :  { %10 = vsyncpa [#allocation6], 0 }
   0x2   :  { %11 = vsyncpa [#allocation9], 0 }
   0x3   :  { %12 = vsyncpa [#allocation4], 0  ;;  %s3934_s15 = smov [#allocation5]   ;;  %s3816_s19 = scalar_lea.hbm %s4113_s1, 20480 }
   0x4   :  { %s30_s16 = sshll.u32 %s3934_s15, 4  ;;  %p3817_p0 = scmp.ne.s32.totalorder %s4113_s1, %s3816_s19  ;;  %s31_s16 = int_to_ptr.vmem [resolvable:$true] %s30_s16 }
   0x5   :  { %p3820_p1 = scmp.lt.u32.totalorder %s3816_s19, %s4113_s1 }
   0x7   :  { %p3822_p2 = pnand %p3820_p1, %p3817_p0 }
   0x9   :  { %3825 = shalt.err (!%p3822_p2)
}
   0xa   :  { %s3826_s24 = scalar_lea.vmem %s31_s16, 20480  ;;  %p3831_p4 = scmp.lt.s32.totalorder %s31_s16, %s31_s16 }
   0xb   :  { %p3827_p3 = scmp.ne.s32.totalorder %s31_s16, %s3826_s24  ;;  %p3832_p5 = scmp.lt.s32.totalorder %s3826_s24, %s3826_s24 }
   0xd   :  { %p3833_p6 = por %p3832_p5, %p3831_p4 }
   0xf   :  { %p3834_p7 = pnand %p3833_p6, %p3827_p3 }
  0x11   :  { %3837 = shalt.err (!%p3834_p7)
}
  0x12   :  { %s3935_s25 = smov 256   ;;  %s3936_s26 = smov 16  }
  0x13   :  { %36 = dma.hbm_to_vmem [thread:$0]  %s4113_s1, 20480, %s31_s16, [#allocation6], %s3935_s25, %s3935_s25, %s3936_s26  }
  0x14   :  { %s3937_s29 = smov [#allocation2]   ;;  %s3838_s7 = scalar_lea.hbm %s4112_s0, 1280 }
  0x15   :  { %s18_s30 = sshll.u32 %s3937_s29, 4  ;;  %p3839_p8 = scmp.ne.s32.totalorder %s4112_s0, %s3838_s7  ;;  %s19_s30 = int_to_ptr.vmem [resolvable:$true] %s18_s30 }
  0x16   :  { %p3842_p9 = scmp.lt.u32.totalorder %s3838_s7, %s4112_s0 }
  0x18   :  { %p3844_p10 = pnand %p3842_p9, %p3839_p8 }
  0x1a   :  { %3847 = shalt.err (!%p3844_p10)
}
  0x1b   :  { %s3848_s12 = scalar_lea.vmem %s19_s30, 1280  ;;  %p3853_p12 = scmp.lt.s32.totalorder %s19_s30, %s19_s30 }
  0x1c   :  { %p3849_p11 = scmp.ne.s32.totalorder %s19_s30, %s3848_s12  ;;  %p3854_p13 = scmp.lt.s32.totalorder %s3848_s12, %s3848_s12 }
  0x1e   :  { %p3855_p0 = por %p3854_p13, %p3853_p12 }
  0x20   :  { %p3856_p1 = pnand %p3855_p0, %p3849_p11 }
  0x22   :  { %3859 = shalt.err (!%p3856_p1)
}
  0x23   :  { %s3938_s1 = smov 640   ;;  %s3939_s13 = smov 40  }
  0x24   :  { %24 = dma.hbm_to_vmem [thread:$0]  %s4112_s0, 1280, %s19_s30, [#allocation3], %s3938_s1, %s3938_s1, %s3939_s13  }
  0x25   :  { %s3940_s16 = smov [#allocation7]   ;;  %s3860_s20 = scalar_lea.hbm %s4114_s2, 20480 }
  0x26   :  { %s42_s17 = sshll.u32 %s3940_s16, 4  ;;  %p3861_p2 = scmp.ne.s32.totalorder %s4114_s2, %s3860_s20  ;;  %s43_s17 = int_to_ptr.vmem [resolvable:$true] %s42_s17 }
  0x27   :  { %p3864_p3 = scmp.lt.u32.totalorder %s3860_s20, %s4114_s2 }
  0x29   :  { %p3866_p4 = pnand %p3864_p3, %p3861_p2 }
  0x2b   :  { %3869 = shalt.err (!%p3866_p4)
}
  0x2c   :  { %s3870_s25 = scalar_lea.vmem %s43_s17, 20480  ;;  %p3875_p6 = scmp.lt.s32.totalorder %s43_s17, %s43_s17 }
  0x2d   :  { %p3871_p5 = scmp.ne.s32.totalorder %s43_s17, %s3870_s25  ;;  %p3876_p7 = scmp.lt.s32.totalorder %s3870_s25, %s3870_s25 }
  0x2f   :  { %p3877_p8 = por %p3876_p7, %p3875_p6 }
  0x31   :  { %p3878_p9 = pnand %p3877_p8, %p3871_p5 }
  0x33   :  { %3881 = shalt.err (!%p3878_p9)
}
  0x34   :  { %s3941_s0 = smov 320   ;;  %s3942_s26 = smov 20  }
  0x35   :  { %48 = dma.hbm_to_vmem [thread:$0]  %s4114_s2, 20480, %s43_s17, [#allocation6], %s3941_s0, %s3941_s0, %s3942_s26  }
  0x36   :  { %s3943_s29 = smov [#allocation8]   ;;  %s3882_s7 = scalar_lea.hbm %s4115_s3, 320 }
  0x37   :  { %s55_s30 = sshll.u32 %s3943_s29, 4  ;;  %p3883_p10 = scmp.ne.s32.totalorder %s4115_s3, %s3882_s7  ;;  %s56_s30 = int_to_ptr.vmem [resolvable:$true] %s55_s30 }
  0x38   :  { %p3886_p11 = scmp.lt.u32.totalorder %s3882_s7, %s4115_s3 }
  0x3a   :  { %p3888_p12 = pnand %p3886_p11, %p3883_p10 }
  0x3c   :  { %3891 = shalt.err (!%p3888_p12)
}
  0x3d   :  { %s3892_s12 = scalar_lea.vmem %s56_s30, 320  ;;  %p3897_p0 = scmp.lt.s32.totalorder %s56_s30, %s56_s30 }
  0x3e   :  { %p3893_p13 = scmp.ne.s32.totalorder %s56_s30, %s3892_s12  ;;  %p3898_p1 = scmp.lt.s32.totalorder %s3892_s12, %s3892_s12 }
  0x40   :  { %p3899_p2 = por %p3898_p1, %p3897_p0 }
  0x42   :  { %p3900_p3 = pnand %p3899_p2, %p3893_p13 }
  0x44   :  { %3903 = shalt.err (!%p3900_p3)
}
  0x45   :  { %58 = dma.hbm_to_vmem [thread:$0]  %s4115_s3, 320, %s56_s30, [#allocation9]  }
  0x46   :  { %3926 = dma.done.wait [#allocation3], 1280  }
  0x47   :  { %3927 = vsyncadd [#allocation3], 4294966016 }
  0x48   :  { %3928 = dma.done.wait [#allocation6], 40960  }
  0x49   :  { %3929 = vsyncadd [#allocation6], 4294926336 }
  0x4a   :  { %3930 = dma.done.wait [#allocation9], 320  }
  0x4b   :  { %3931 = vsyncadd [#allocation9], 4294966976  ;;  %v3332_v0 = vld [vmem:[#allocation5 + $0x4] ss:$16 sps:$4 sm:$0xff]   ;;  %v3334_v1 = vld [vmem:[#allocation5 + $0xc] ss:$16 sps:$4 sm:$0xff]  }
  0x4c   :  { %1280 = vmatprep.subr.bf16.mxu0 %v3332_v0  ;;  %v3336_v2 = vld [vmem:[#allocation5] ss:$16 sps:$4 sm:$0xff]   ;;  %v3337_v3 = vld [vmem:[#allocation5 + $0x8] ss:$16 sps:$4 sm:$0xff]   ;;  %1409 = vmatprep.subr.bf16.mxu1 %v3334_v1  ;;  %v3338_v4 = vld [vmem:[#allocation5 + $0x24] ss:$16 sps:$4 sm:$0xff]  }
  0x4d   :  { %1281 = vmatpush1.bf16.msra.mxu0 %v3336_v2  ;;  %1410 = vmatpush1.bf16.msra.mxu1 %v3337_v3  ;;  %v3340_v5 = vld [vmem:[#allocation5 + $0x2c] ss:$16 sps:$4 sm:$0xff]   ;;  %v3342_v6 = vld [vmem:[#allocation5 + $0x20] ss:$16 sps:$4 sm:$0xff]   ;;  %v3343_v7 = vld [vmem:[#allocation5 + $0x28] ss:$16 sps:$4 sm:$0xff]  }
  0x4e   :  { %1282 = vmatprep.subr.bf16.mxu0 %v3338_v4  ;;  %1411 = vmatprep.subr.bf16.mxu1 %v3340_v5  ;;  %v3344_v8 = vld [vmem:[#allocation5 + $0x44] ss:$16 sps:$4 sm:$0xff]   ;;  %v3346_v9 = vld [vmem:[#allocation5 + $0x4c] ss:$16 sps:$4 sm:$0xff]   ;;  %v3348_v10 = vld [vmem:[#allocation5 + $0x40] ss:$16 sps:$4 sm:$0xff]  }
  0x4f   :  { %v3349_v11 = vld [vmem:[#allocation5 + $0x48] ss:$16 sps:$4 sm:$0xff]   ;;  %v3350_v12 = vld [vmem:[#allocation5 + $0x64] ss:$16 sps:$4 sm:$0xff]   ;;  %v3352_v13 = vld [vmem:[#allocation5 + $0x6c] ss:$16 sps:$4 sm:$0xff]  }
  0x50   :  { %v3354_v14 = vld [vmem:[#allocation5 + $0x60] ss:$16 sps:$4 sm:$0xff]   ;;  %v3355_v15 = vld [vmem:[#allocation5 + $0x68] ss:$16 sps:$4 sm:$0xff]   ;;  %v3356_v16 = vld [vmem:[#allocation5 + $0x84] ss:$16 sps:$4 sm:$0xff]  }
  0x51   :  { %1283 = vmatpush1.bf16.msra.mxu0 %v3342_v6  ;;  %1412 = vmatpush1.bf16.msra.mxu1 %v3343_v7  ;;  %v3358_v17 = vld [vmem:[#allocation5 + $0x8c] ss:$16 sps:$4 sm:$0xff]   ;;  %v3360_v18 = vld [vmem:[#allocation5 + $0x80] ss:$16 sps:$4 sm:$0xff]   ;;  %v3361_v19 = vld [vmem:[#allocation5 + $0x88] ss:$16 sps:$4 sm:$0xff]  }
  0x52   :  { %1284 = vmatprep.subr.bf16.mxu0 %v3344_v8  ;;  %1413 = vmatprep.subr.bf16.mxu1 %v3346_v9  ;;  %v3362_v20 = vld [vmem:[#allocation5 + $0xa4] ss:$16 sps:$4 sm:$0xff]   ;;  %v3364_v21 = vld [vmem:[#allocation5 + $0xac] ss:$16 sps:$4 sm:$0xff]   ;;  %v3366_v22 = vld [vmem:[#allocation5 + $0xa0] ss:$16 sps:$4 sm:$0xff]  }
  0x53   :  { %v3367_v23 = vld [vmem:[#allocation5 + $0xa8] ss:$16 sps:$4 sm:$0xff]   ;;  %v3368_v24 = vld [vmem:[#allocation5 + $0xc4] ss:$16 sps:$4 sm:$0xff]   ;;  %v3370_v25 = vld [vmem:[#allocation5 + $0xcc] ss:$16 sps:$4 sm:$0xff]  }
  0x54   :  { %v3372_v26 = vld [vmem:[#allocation5 + $0xc0] ss:$16 sps:$4 sm:$0xff]   ;;  %v3373_v27 = vld [vmem:[#allocation5 + $0xc8] ss:$16 sps:$4 sm:$0xff]   ;;  %v3374_v28 = vld [vmem:[#allocation5 + $0xe4] ss:$16 sps:$4 sm:$0xff]  }
  0x55   :  { %1285 = vmatpush1.bf16.msra.mxu0 %v3348_v10  ;;  %1414 = vmatpush1.bf16.msra.mxu1 %v3349_v11  ;;  %v3376_v29 = vld [vmem:[#allocation5 + $0xec] ss:$16 sps:$4 sm:$0xff]   ;;  %v3378_v30 = vld [vmem:[#allocation5 + $0xe0] ss:$16 sps:$4 sm:$0xff]   ;;  %v3379_v31 = vld [vmem:[#allocation5 + $0xe8] ss:$16 sps:$4 sm:$0xff]  }
  0x56   :  { %1286 = vmatprep.subr.bf16.mxu0 %v3350_v12  ;;  %1415 = vmatprep.subr.bf16.mxu1 %v3352_v13  ;;  %v3380_v32 = vld [vmem:[#allocation5 + $0x104] ss:$16 sps:$4 sm:$0xff]   ;;  %v3382_v33 = vld [vmem:[#allocation5 + $0x10c] ss:$16 sps:$4 sm:$0xff]   ;;  %v3384_v34 = vld [vmem:[#allocation5 + $0x100] ss:$16 sps:$4 sm:$0xff]  }
  0x57   :  { %v3385_v35 = vld [vmem:[#allocation5 + $0x108] ss:$16 sps:$4 sm:$0xff]   ;;  %v3386_v36 = vld [vmem:[#allocation5 + $0x124] ss:$16 sps:$4 sm:$0xff]   ;;  %v3388_v37 = vld [vmem:[#allocation5 + $0x12c] ss:$16 sps:$4 sm:$0xff]  }
  0x58   :  { %v3390_v38 = vld [vmem:[#allocation5 + $0x120] ss:$16 sps:$4 sm:$0xff]   ;;  %v3391_v39 = vld [vmem:[#allocation5 + $0x128] ss:$16 sps:$4 sm:$0xff]   ;;  %v3392_v40 = vld [vmem:[#allocation5 + $0x144] ss:$16 sps:$4 sm:$0xff]  }
  0x59   :  { %1287 = vmatpush1.bf16.msra.mxu0 %v3354_v14  ;;  %1416 = vmatpush1.bf16.msra.mxu1 %v3355_v15  ;;  %v3394_v41 = vld [vmem:[#allocation5 + $0x14c] ss:$16 sps:$4 sm:$0xff]   ;;  %v3396_v42 = vld [vmem:[#allocation5 + $0x140] ss:$16 sps:$4 sm:$0xff]   ;;  %v3397_v43 = vld [vmem:[#allocation5 + $0x148] ss:$16 sps:$4 sm:$0xff]  }
  0x5a   :  { %1288 = vmatprep.subr.bf16.mxu0 %v3356_v16  ;;  %1417 = vmatprep.subr.bf16.mxu1 %v3358_v17  ;;  %v3398_v44 = vld [vmem:[#allocation5 + $0x164] ss:$16 sps:$4 sm:$0xff]   ;;  %v3400_v45 = vld [vmem:[#allocation5 + $0x16c] ss:$16 sps:$4 sm:$0xff]   ;;  %v3402_v48 = vld [vmem:[#allocation5 + $0x160] ss:$16 sps:$4 sm:$0xff]  }
  0x5b   :  { %v73_v46 = vld [vmem:[#allocation2 + $0x8] sm:$0xff]  ;;  %v78_v47 = vld [vmem:[#allocation2 + $0x30] sm:$0xff]  ;;  %v72_v4 = vld [vmem:[#allocation2] sm:$0xff]  ;;  %s3945_s3 = smov [#allocation10]  }
  0x5c   :  { %v3403_v49 = vld [vmem:[#allocation5 + $0x168] ss:$16 sps:$4 sm:$0xff]   ;;  %v83_v50 = vpack.c.bf16 %v78_v47, %v73_v46  ;;  %v3404_v51 = vld [vmem:[#allocation5 + $0x184] ss:$16 sps:$4 sm:$0xff]   ;;  %v3406_v52 = vld [vmem:[#allocation5 + $0x18c] ss:$16 sps:$4 sm:$0xff]  }
  0x5d   :  { %1289 = vmatpush1.bf16.msra.mxu0 %v3360_v18  ;;  %1418 = vmatpush1.bf16.msra.mxu1 %v3361_v19  ;;  %v3408_v53 = vld [vmem:[#allocation5 + $0x180] ss:$16 sps:$4 sm:$0xff]   ;;  %v3409_v54 = vld [vmem:[#allocation5 + $0x188] ss:$16 sps:$4 sm:$0xff]   ;;  %v3410_v55 = vld [vmem:[#allocation5 + $0x1a4] ss:$16 sps:$4 sm:$0xff]  }
  0x5e   :  { %1290 = vmatprep.subr.bf16.mxu0 %v3362_v20  ;;  %1419 = vmatprep.subr.bf16.mxu1 %v3364_v21  ;;  %v3412_v56 = vld [vmem:[#allocation5 + $0x1ac] ss:$16 sps:$4 sm:$0xff]   ;;  %v3414_v57 = vld [vmem:[#allocation5 + $0x1a0] ss:$16 sps:$4 sm:$0xff]   ;;  %v3415_v58 = vld [vmem:[#allocation5 + $0x1a8] ss:$16 sps:$4 sm:$0xff]  }
  0x5f   :  { %1312 = vmatprep.mubr.bf16.mxu0 %v83_v50  ;;  %1441 = vmatprep.mubr.bf16.mxu1 %v83_v50  ;;  %v3416_v59 = vld [vmem:[#allocation5 + $0x1c4] ss:$16 sps:$4 sm:$0xff]   ;;  %v3418_v60 = vld [vmem:[#allocation5 + $0x1cc] ss:$16 sps:$4 sm:$0xff]   ;;  %v3420_v61 = vld [vmem:[#allocation5 + $0x1c0] ss:$16 sps:$4 sm:$0xff]  }
  0x60   :  { %v3421_v62 = vld [vmem:[#allocation5 + $0x1c8] ss:$16 sps:$4 sm:$0xff]   ;;  %v3422_v63 = vld [vmem:[#allocation5 + $0x1e4] ss:$16 sps:$4 sm:$0xff]   ;;  %v3424_v0 = vld [vmem:[#allocation5 + $0x1ec] ss:$16 sps:$4 sm:$0xff]  }
  0x61   :  { %1291 = vmatpush1.bf16.msra.mxu0 %v3366_v22  ;;  %1420 = vmatpush1.bf16.msra.mxu1 %v3367_v23  ;;  %v3426_v1 = vld [vmem:[#allocation5 + $0x1e0] ss:$16 sps:$4 sm:$0xff]   ;;  %v3427_v2 = vld [vmem:[#allocation5 + $0x1e8] ss:$16 sps:$4 sm:$0xff]   ;;  %v3430_v3 = vld [vmem:[#allocation5 + $0x204] ss:$16 sps:$4 sm:$0xff]  }
  0x62   :  { %1292 = vmatprep.subr.bf16.mxu0 %v3368_v24  ;;  %1421 = vmatprep.subr.bf16.mxu1 %v3370_v25  ;;  %v77_v5 = vld [vmem:[#allocation2 + $0x28] sm:$0xff]  ;;  %v3428_v7 = vld [vmem:[#allocation5 + $0x200] ss:$16 sps:$4 sm:$0xff]   ;;  %v3436_v10 = vld [vmem:[#allocation5 + $0x224] ss:$16 sps:$4 sm:$0xff]   ;;  %s2902_s15 = sshll.u32 %s3945_s3, 4  ;;  %s2903_s15 = int_to_ptr.vmem [resolvable:$true] %s2902_s15 }
  0x63   :  { %v3433_v6 = vld [vmem:[#allocation5 + $0x20c] ss:$16 sps:$4 sm:$0xff]   ;;  %v3431_v8 = vld [vmem:[#allocation5 + $0x208] ss:$16 sps:$4 sm:$0xff]   ;;  %v82_v9 = vpack.c.bf16 %v77_v5, %v72_v4  ;;  %v3434_v12 = vld [vmem:[#allocation5 + $0x220] ss:$16 sps:$4 sm:$0xff]   ;;  %p3909_p5 = scmp.lt.s32.totalorder %s2903_s15, %s2903_s15 }
  0x64   :  { %v3439_v11 = vld [vmem:[#allocation5 + $0x22c] ss:$16 sps:$4 sm:$0xff]   ;;  %v3437_v13 = vld [vmem:[#allocation5 + $0x228] ss:$16 sps:$4 sm:$0xff]   ;;  %v3442_v14 = vld [vmem:[#allocation5 + $0x244] ss:$16 sps:$4 sm:$0xff]  }
  0x65   :  { %1293 = vmatpush1.bf16.msra.mxu0 %v3372_v26  ;;  %1422 = vmatpush1.bf16.msra.mxu1 %v3373_v27  ;;  %v3445_v15 = vld [vmem:[#allocation5 + $0x24c] ss:$16 sps:$4 sm:$0xff]   ;;  %v3440_v16 = vld [vmem:[#allocation5 + $0x240] ss:$16 sps:$4 sm:$0xff]   ;;  %v3443_v17 = vld [vmem:[#allocation5 + $0x248] ss:$16 sps:$4 sm:$0xff]  }
  0x66   :  { %1294 = vmatprep.subr.bf16.mxu0 %v3374_v28  ;;  %1423 = vmatprep.subr.bf16.mxu1 %v3376_v29  ;;  %v3448_v18 = vld [vmem:[#allocation5 + $0x264] ss:$16 sps:$4 sm:$0xff]   ;;  %v3451_v19 = vld [vmem:[#allocation5 + $0x26c] ss:$16 sps:$4 sm:$0xff]   ;;  %v3446_v20 = vld [vmem:[#allocation5 + $0x260] ss:$16 sps:$4 sm:$0xff]  }
  0x67   :  { %v3449_v21 = vld [vmem:[#allocation5 + $0x268] ss:$16 sps:$4 sm:$0xff]   ;;  %v3454_v22 = vld [vmem:[#allocation5 + $0x284] ss:$16 sps:$4 sm:$0xff]   ;;  %v3457_v23 = vld [vmem:[#allocation5 + $0x28c] ss:$16 sps:$4 sm:$0xff]  }
  0x68   :  { %v3452_v24 = vld [vmem:[#allocation5 + $0x280] ss:$16 sps:$4 sm:$0xff]   ;;  %v3455_v25 = vld [vmem:[#allocation5 + $0x288] ss:$16 sps:$4 sm:$0xff]   ;;  %v3460_v26 = vld [vmem:[#allocation5 + $0x2a4] ss:$16 sps:$4 sm:$0xff]  }
  0x69   :  { %1295 = vmatpush1.bf16.msra.mxu0 %v3378_v30  ;;  %1424 = vmatpush1.bf16.msra.mxu1 %v3379_v31  ;;  %v3463_v27 = vld [vmem:[#allocation5 + $0x2ac] ss:$16 sps:$4 sm:$0xff]   ;;  %v3458_v28 = vld [vmem:[#allocation5 + $0x2a0] ss:$16 sps:$4 sm:$0xff]   ;;  %v3461_v29 = vld [vmem:[#allocation5 + $0x2a8] ss:$16 sps:$4 sm:$0xff]  }
  0x6a   :  { %1296 = vmatprep.subr.bf16.mxu0 %v3380_v32  ;;  %1425 = vmatprep.subr.bf16.mxu1 %v3382_v33  ;;  %v3466_v30 = vld [vmem:[#allocation5 + $0x2c4] ss:$16 sps:$4 sm:$0xff]   ;;  %v3469_v31 = vld [vmem:[#allocation5 + $0x2cc] ss:$16 sps:$4 sm:$0xff]   ;;  %v3482_v47 = vld [vmem:[#allocation5 + $0x320] ss:$16 sps:$4 sm:$0xff]  }
  0x6b   :  { %v75_v32 = vld [vmem:[#allocation2 + $0x18] sm:$0xff]  ;;  %v80_v33 = vld [vmem:[#allocation2 + $0x40] sm:$0xff]  ;;  %s3904_s16 = scalar_lea.vmem %s2903_s15, 1280 }
  0x6c   :  { %v3487_v46 = vld [vmem:[#allocation5 + $0x32c] ss:$16 sps:$4 sm:$0xff]   ;;  %v3515_v4 = vld [vmem:[#allocation5 + $0x3c8] ss:$16 sps:$4 sm:$0xff]   ;;  %v3520_v5 = vld [vmem:[#allocation5 + $0x3e4] ss:$16 sps:$4 sm:$0xff]   ;;  %p3905_p4 = scmp.ne.s32.totalorder %s2903_s15, %s3904_s16  ;;  %p3910_p6 = scmp.lt.s32.totalorder %s3904_s16, %s3904_s16 }
  0x6d   :  { %1297 = vmatpush1.bf16.msra.mxu0 %v3384_v34  ;;  %1426 = vmatpush1.bf16.msra.mxu1 %v3385_v35  ;;  %v3464_v34 = vld [vmem:[#allocation5 + $0x2c0] ss:$16 sps:$4 sm:$0xff]   ;;  %v3467_v35 = vld [vmem:[#allocation5 + $0x2c8] ss:$16 sps:$4 sm:$0xff]   ;;  %v3493_v50 = vld [vmem:[#allocation5 + $0x34c] ss:$16 sps:$4 sm:$0xff]  }
  0x6e   :  { %1298 = vmatprep.subr.bf16.mxu0 %v3386_v36  ;;  %1427 = vmatprep.subr.bf16.mxu1 %v3388_v37  ;;  %v85_v36 = vpack.c.bf16 %v80_v33, %v75_v32  ;;  %v3472_v37 = vld [vmem:[#allocation5 + $0x2e4] ss:$16 sps:$4 sm:$0xff]   ;;  %v3551_v32 = vld [vmem:[#allocation5 + $0x488] ss:$16 sps:$4 sm:$0xff]   ;;  %p3911_p7 = por %p3910_p6, %p3909_p5 }
  0x6f   :  { %v3556_v33 = vld [vmem:[#allocation5 + $0x4a4] ss:$16 sps:$4 sm:$0xff]  }
  0x70   :  { %p3912_p8 = pnand %p3911_p7, %p3905_p4 }
  0x71   :  { %1299 = vmatpush1.bf16.msra.mxu0 %v3390_v38  ;;  %1428 = vmatpush1.bf16.msra.mxu1 %v3391_v39  ;;  %v3475_v38 = vld [vmem:[#allocation5 + $0x2ec] ss:$16 sps:$4 sm:$0xff]   ;;  %v3470_v39 = vld [vmem:[#allocation5 + $0x2e0] ss:$16 sps:$4 sm:$0xff]  }
  0x72   :  { %1300 = vmatprep.subr.bf16.mxu0 %v3392_v40  ;;  %1429 = vmatprep.subr.bf16.mxu1 %v3394_v41  ;;  %v3473_v40 = vld [vmem:[#allocation5 + $0x2e8] ss:$16 sps:$4 sm:$0xff]   ;;  %v3478_v41 = vld [vmem:[#allocation5 + $0x304] ss:$16 sps:$4 sm:$0xff]  }
  0x75   :  { %1301 = vmatpush1.bf16.msra.mxu0 %v3396_v42  ;;  %1430 = vmatpush1.bf16.msra.mxu1 %v3397_v43  ;;  %v3481_v42 = vld [vmem:[#allocation5 + $0x30c] ss:$16 sps:$4 sm:$0xff]   ;;  %v3476_v43 = vld [vmem:[#allocation5 + $0x300] ss:$16 sps:$4 sm:$0xff]  }
  0x76   :  { %1302 = vmatprep.subr.bf16.mxu0 %v3398_v44  ;;  %1431 = vmatprep.subr.bf16.mxu1 %v3400_v45  ;;  %v3479_v44 = vld [vmem:[#allocation5 + $0x308] ss:$16 sps:$4 sm:$0xff]   ;;  %v3484_v45 = vld [vmem:[#allocation5 + $0x324] ss:$16 sps:$4 sm:$0xff]  }
  0x79   :  { %1303 = vmatpush1.bf16.msra.mxu0 %v3402_v48  ;;  %1432 = vmatpush1.bf16.msra.mxu1 %v3403_v49  ;;  %v3485_v48 = vld [vmem:[#allocation5 + $0x328] ss:$16 sps:$4 sm:$0xff]   ;;  %v3490_v49 = vld [vmem:[#allocation5 + $0x344] ss:$16 sps:$4 sm:$0xff]  }
  0x7a   :  { %1304 = vmatprep.subr.bf16.mxu0 %v3404_v51  ;;  %1433 = vmatprep.subr.bf16.mxu1 %v3406_v52  ;;  %v3488_v51 = vld [vmem:[#allocation5 + $0x340] ss:$16 sps:$4 sm:$0xff]   ;;  %v3491_v52 = vld [vmem:[#allocation5 + $0x348] ss:$16 sps:$4 sm:$0xff]  }
  0x7d   :  { %1305 = vmatpush1.bf16.msra.mxu0 %v3408_v53  ;;  %1434 = vmatpush1.bf16.msra.mxu1 %v3409_v54  ;;  %v3496_v53 = vld [vmem:[#allocation5 + $0x364] ss:$16 sps:$4 sm:$0xff]   ;;  %v3499_v54 = vld [vmem:[#allocation5 + $0x36c] ss:$16 sps:$4 sm:$0xff]  }
  0x7e   :  { %1306 = vmatprep.subr.bf16.mxu0 %v3410_v55  ;;  %1435 = vmatprep.subr.bf16.mxu1 %v3412_v56  ;;  %v3494_v55 = vld [vmem:[#allocation5 + $0x360] ss:$16 sps:$4 sm:$0xff]   ;;  %v3497_v56 = vld [vmem:[#allocation5 + $0x368] ss:$16 sps:$4 sm:$0xff]  }
  0x81   :  { %1307 = vmatpush1.bf16.msra.mxu0 %v3414_v57  ;;  %1436 = vmatpush1.bf16.msra.mxu1 %v3415_v58  ;;  %v3502_v57 = vld [vmem:[#allocation5 + $0x384] ss:$16 sps:$4 sm:$0xff]   ;;  %v3505_v58 = vld [vmem:[#allocation5 + $0x38c] ss:$16 sps:$4 sm:$0xff]  }
  0x82   :  { %1308 = vmatprep.subr.bf16.mxu0 %v3416_v59  ;;  %1437 = vmatprep.subr.bf16.mxu1 %v3418_v60  ;;  %v3500_v59 = vld [vmem:[#allocation5 + $0x380] ss:$16 sps:$4 sm:$0xff]   ;;  %v3503_v60 = vld [vmem:[#allocation5 + $0x388] ss:$16 sps:$4 sm:$0xff]  }
  0x85   :  { %1309 = vmatpush1.bf16.msra.mxu0 %v3420_v61  ;;  %1438 = vmatpush1.bf16.msra.mxu1 %v3421_v62  ;;  %v3508_v61 = vld [vmem:[#allocation5 + $0x3a4] ss:$16 sps:$4 sm:$0xff]   ;;  %v3511_v62 = vld [vmem:[#allocation5 + $0x3ac] ss:$16 sps:$4 sm:$0xff]  }
  0x86   :  { %1310 = vmatprep.subr.bf16.mxu0 %v3422_v63  ;;  %1439 = vmatprep.subr.bf16.mxu1 %v3424_v0  ;;  %v3506_v63 = vld [vmem:[#allocation5 + $0x3a0] ss:$16 sps:$4 sm:$0xff]   ;;  %v3509_v0 = vld [vmem:[#allocation5 + $0x3a8] ss:$16 sps:$4 sm:$0xff]  }
  0x89   :  { %1311 = vmatpush1.bf16.msra.mxu0 %v3426_v1  ;;  %1440 = vmatpush1.bf16.msra.mxu1 %v3427_v2  ;;  %v3514_v1 = vld [vmem:[#allocation5 + $0x3c4] ss:$16 sps:$4 sm:$0xff]   ;;  %v3517_v2 = vld [vmem:[#allocation5 + $0x3cc] ss:$16 sps:$4 sm:$0xff]  }
  0x8a   :  { %1323 = vmatprep.subr.bf16.mxu0 %v3430_v3  ;;  %1452 = vmatprep.subr.bf16.mxu1 %v3433_v6  ;;  %v3512_v3 = vld [vmem:[#allocation5 + $0x3c0] ss:$16 sps:$4 sm:$0xff]   ;;  %v3523_v6 = vld [vmem:[#allocation5 + $0x3ec] ss:$16 sps:$4 sm:$0xff]  }
  0x8c   :  { %1313 = vmatmul.mubr.bf16.vlgmr.msra.gmra.mrb[0].mxu0 %v82_v9  ;;  %1442 = vmatmul.mubr.bf16.vlgmr.msra.gmra.mrb[0].mxu1 %v82_v9  ;;  %v74_v9 = vld [vmem:[#allocation2 + $0x10] sm:$0xff] }
  0x8d   :  { %1324 = vmatpush1.bf16.msra.mxu0 %v3428_v7  ;;  %1453 = vmatpush1.bf16.msra.mxu1 %v3431_v8  ;;  %v3518_v7 = vld [vmem:[#allocation5 + $0x3e0] ss:$16 sps:$4 sm:$0xff]   ;;  %v3521_v8 = vld [vmem:[#allocation5 + $0x3e8] ss:$16 sps:$4 sm:$0xff]  }
  0x8e   :  { %1325 = vmatprep.subr.bf16.mxu0 %v3436_v10  ;;  %1454 = vmatprep.subr.bf16.mxu1 %v3439_v11  ;;  %v79_v10 = vld [vmem:[#allocation2 + $0x38] sm:$0xff]  ;;  %v3526_v11 = vld [vmem:[#allocation5 + $0x404] ss:$16 sps:$4 sm:$0xff]  }
  0x8f   :  { %1355 = vmatprep.mubr.bf16.mxu0 %v85_v36  ;;  %1484 = vmatprep.mubr.bf16.mxu1 %v85_v36  ;;  %v3557_v36 = vld [vmem:[#allocation5 + $0x4a8] ss:$16 sps:$4 sm:$0xff]  }
  0x91   :  { %1326 = vmatpush1.bf16.msra.mxu0 %v3434_v12  ;;  %1455 = vmatpush1.bf16.msra.mxu1 %v3437_v13  ;;  %v3529_v12 = vld [vmem:[#allocation5 + $0x40c] ss:$16 sps:$4 sm:$0xff]   ;;  %v84_v13 = vpack.c.bf16 %v79_v10, %v74_v9  ;;  %v3608_v10 = vld [vmem:[#allocation7 + $0xf0] ss:$20 sps:$4 sm:$0xff]  }
  0x92   :  { %1327 = vmatprep.subr.bf16.mxu0 %v3442_v14  ;;  %1456 = vmatprep.subr.bf16.mxu1 %v3445_v15  ;;  %v3524_v14 = vld [vmem:[#allocation5 + $0x400] ss:$16 sps:$4 sm:$0xff]   ;;  %v3527_v15 = vld [vmem:[#allocation5 + $0x408] ss:$16 sps:$4 sm:$0xff]  }
  0x93   :  { %v3613_v9 = vld [vmem:[#allocation7 + $0xfc] ss:$20 sps:$4 sm:$0xff]  }
  0x95   :  { %1328 = vmatpush1.bf16.msra.mxu0 %v3440_v16  ;;  %1457 = vmatpush1.bf16.msra.mxu1 %v3443_v17  ;;  %v3532_v16 = vld [vmem:[#allocation5 + $0x424] ss:$16 sps:$4 sm:$0xff]   ;;  %v3535_v17 = vld [vmem:[#allocation5 + $0x42c] ss:$16 sps:$4 sm:$0xff]  }
  0x96   :  { %1329 = vmatprep.subr.bf16.mxu0 %v3448_v18  ;;  %1458 = vmatprep.subr.bf16.mxu1 %v3451_v19  ;;  %v3530_v18 = vld [vmem:[#allocation5 + $0x420] ss:$16 sps:$4 sm:$0xff]   ;;  %v3533_v19 = vld [vmem:[#allocation5 + $0x428] ss:$16 sps:$4 sm:$0xff]  }
  0x99   :  { %1330 = vmatpush1.bf16.msra.mxu0 %v3446_v20  ;;  %1459 = vmatpush1.bf16.msra.mxu1 %v3449_v21  ;;  %v3538_v20 = vld [vmem:[#allocation5 + $0x444] ss:$16 sps:$4 sm:$0xff]   ;;  %v3541_v21 = vld [vmem:[#allocation5 + $0x44c] ss:$16 sps:$4 sm:$0xff]  }
  0x9a   :  { %1331 = vmatprep.subr.bf16.mxu0 %v3454_v22  ;;  %1460 = vmatprep.subr.bf16.mxu1 %v3457_v23  ;;  %v3944_v22 = vmov 0   ;;  %v3536_v23 = vld [vmem:[#allocation5 + $0x440] ss:$16 sps:$4 sm:$0xff]  }
  0x9d   :  { %1332 = vmatpush1.bf16.msra.mxu0 %v3452_v24  ;;  %1461 = vmatpush1.bf16.msra.mxu1 %v3455_v25  ;;  %v3539_v24 = vld [vmem:[#allocation5 + $0x448] ss:$16 sps:$4 sm:$0xff]   ;;  %v3544_v25 = vld [vmem:[#allocation5 + $0x464] ss:$16 sps:$4 sm:$0xff]  }
  0x9e   :  { %1333 = vmatprep.subr.bf16.mxu0 %v3460_v26  ;;  %1462 = vmatprep.subr.bf16.mxu1 %v3463_v27  ;;  %v3547_v26 = vld [vmem:[#allocation5 + $0x46c] ss:$16 sps:$4 sm:$0xff]   ;;  %v3542_v27 = vld [vmem:[#allocation5 + $0x460] ss:$16 sps:$4 sm:$0xff]  }
  0xa1   :  { %1334 = vmatpush1.bf16.msra.mxu0 %v3458_v28  ;;  %1463 = vmatpush1.bf16.msra.mxu1 %v3461_v29  ;;  %v3545_v28 = vld [vmem:[#allocation5 + $0x468] ss:$16 sps:$4 sm:$0xff]   ;;  %v3550_v29 = vld [vmem:[#allocation5 + $0x484] ss:$16 sps:$4 sm:$0xff]  }
  0xa2   :  { %1335 = vmatprep.subr.bf16.mxu0 %v3466_v30  ;;  %1464 = vmatprep.subr.bf16.mxu1 %v3469_v31  ;;  %v3553_v30 = vld [vmem:[#allocation5 + $0x48c] ss:$16 sps:$4 sm:$0xff]   ;;  %v3548_v31 = vld [vmem:[#allocation5 + $0x480] ss:$16 sps:$4 sm:$0xff]  }
  0xa5   :  { %1336 = vmatpush1.bf16.msra.mxu0 %v3464_v34  ;;  %1465 = vmatpush1.bf16.msra.mxu1 %v3467_v35  ;;  %v3559_v34 = vld [vmem:[#allocation5 + $0x4ac] ss:$16 sps:$4 sm:$0xff]   ;;  %v3554_v35 = vld [vmem:[#allocation5 + $0x4a0] ss:$16 sps:$4 sm:$0xff]  }
  0xa6   :  { %1337 = vmatprep.subr.bf16.mxu0 %v3472_v37  ;;  %1466 = vmatprep.subr.bf16.mxu1 %v3475_v38  ;;  %v3562_v37 = vld [vmem:[#allocation5 + $0x4c4] ss:$16 sps:$4 sm:$0xff]   ;;  %v3565_v38 = vld [vmem:[#allocation5 + $0x4cc] ss:$16 sps:$4 sm:$0xff]  }
  0xa9   :  { %1338 = vmatpush1.bf16.msra.mxu0 %v3470_v39  ;;  %1467 = vmatpush1.bf16.msra.mxu1 %v3473_v40  ;;  %v3560_v39 = vld [vmem:[#allocation5 + $0x4c0] ss:$16 sps:$4 sm:$0xff]   ;;  %v3563_v40 = vld [vmem:[#allocation5 + $0x4c8] ss:$16 sps:$4 sm:$0xff]  }
  0xaa   :  { %1339 = vmatprep.subr.bf16.mxu0 %v3478_v41  ;;  %1468 = vmatprep.subr.bf16.mxu1 %v3481_v42  ;;  %v3568_v41 = vld [vmem:[#allocation5 + $0x4e4] ss:$16 sps:$4 sm:$0xff]   ;;  %v3571_v42 = vld [vmem:[#allocation5 + $0x4ec] ss:$16 sps:$4 sm:$0xff]  }
  0xad   :  { %1340 = vmatpush1.bf16.msra.mxu0 %v3476_v43  ;;  %1469 = vmatpush1.bf16.msra.mxu1 %v3479_v44  ;;  %v3566_v43 = vld [vmem:[#allocation5 + $0x4e0] ss:$16 sps:$4 sm:$0xff]   ;;  %v3569_v44 = vld [vmem:[#allocation5 + $0x4e8] ss:$16 sps:$4 sm:$0xff]  }
  0xae   :  { %1341 = vmatprep.subr.bf16.mxu0 %v3484_v45  ;;  %1470 = vmatprep.subr.bf16.mxu1 %v3487_v46  ;;  %v76_v45 = vld [vmem:[#allocation2 + $0x20] sm:$0xff]  ;;  %v81_v46 = vld [vmem:[#allocation2 + $0x48] sm:$0xff] }
  0xb1   :  { %1342 = vmatpush1.bf16.msra.mxu0 %v3482_v47  ;;  %1471 = vmatpush1.bf16.msra.mxu1 %v3485_v48  ;;  %v3574_v47 = vld [vmem:[#allocation7 + $0x4] ss:$20 sps:$4 sm:$0xff]   ;;  %v3577_v48 = vld [vmem:[#allocation7 + $0xc] ss:$20 sps:$4 sm:$0xff]  }
  0xb2   :  { %1343 = vmatprep.subr.bf16.mxu0 %v3490_v49  ;;  %1472 = vmatprep.subr.bf16.mxu1 %v3493_v50  ;;  %v3572_v49 = vld [vmem:[#allocation7] ss:$20 sps:$4 sm:$0xff]   ;;  %v3575_v50 = vld [vmem:[#allocation7 + $0x8] ss:$20 sps:$4 sm:$0xff]  }
  0xb5   :  { %1344 = vmatpush1.bf16.msra.mxu0 %v3488_v51  ;;  %1473 = vmatpush1.bf16.msra.mxu1 %v3491_v52  ;;  %v86_v51 = vpack.c.bf16 %v81_v46, %v76_v45  ;;  %v3580_v52 = vld [vmem:[#allocation7 + $0x2c] ss:$20 sps:$4 sm:$0xff]   ;;  %v3667_v45 = vld [vmem:[#allocation7 + $0x264] ss:$20 sps:$4 sm:$0xff]  }
  0xb6   :  { %1345 = vmatprep.subr.bf16.mxu0 %v3496_v53  ;;  %1474 = vmatprep.subr.bf16.mxu1 %v3499_v54  ;;  %v3583_v53 = vld [vmem:[#allocation7 + $0x34] ss:$20 sps:$4 sm:$0xff]   ;;  %v3662_v46 = vld [vmem:[#allocation7 + $0x258] ss:$20 sps:$4 sm:$0xff]  }
  0xb7   :  { %v3578_v54 = vld [vmem:[#allocation7 + $0x28] ss:$20 sps:$4 sm:$0xff]  }
  0xb9   :  { %1346 = vmatpush1.bf16.msra.mxu0 %v3494_v55  ;;  %1475 = vmatpush1.bf16.msra.mxu1 %v3497_v56  ;;  %v3581_v55 = vld [vmem:[#allocation7 + $0x30] ss:$20 sps:$4 sm:$0xff]   ;;  %v3586_v56 = vld [vmem:[#allocation7 + $0x54] ss:$20 sps:$4 sm:$0xff]  }
  0xba   :  { %1347 = vmatprep.subr.bf16.mxu0 %v3502_v57  ;;  %1476 = vmatprep.subr.bf16.mxu1 %v3505_v58  ;;  %v3589_v57 = vld [vmem:[#allocation7 + $0x5c] ss:$20 sps:$4 sm:$0xff]  }
  0xbb   :  { %v3584_v58 = vld [vmem:[#allocation7 + $0x50] ss:$20 sps:$4 sm:$0xff]  }
  0xbd   :  { %1348 = vmatpush1.bf16.msra.mxu0 %v3500_v59  ;;  %1477 = vmatpush1.bf16.msra.mxu1 %v3503_v60  ;;  %v3587_v59 = vld [vmem:[#allocation7 + $0x58] ss:$20 sps:$4 sm:$0xff]   ;;  %v3592_v60 = vld [vmem:[#allocation7 + $0x7c] ss:$20 sps:$4 sm:$0xff]  }
  0xbe   :  { %1349 = vmatprep.subr.bf16.mxu0 %v3508_v61  ;;  %1478 = vmatprep.subr.bf16.mxu1 %v3511_v62  ;;  %v3595_v61 = vld [vmem:[#allocation7 + $0x84] ss:$20 sps:$4 sm:$0xff]  }
  0xbf   :  { %v3590_v62 = vld [vmem:[#allocation7 + $0x78] ss:$20 sps:$4 sm:$0xff]  }
  0xc1   :  { %1350 = vmatpush1.bf16.msra.mxu0 %v3506_v63  ;;  %1479 = vmatpush1.bf16.msra.mxu1 %v3509_v0  ;;  %v3593_v63 = vld [vmem:[#allocation7 + $0x80] ss:$20 sps:$4 sm:$0xff]   ;;  %v3598_v0 = vld [vmem:[#allocation7 + $0xa4] ss:$20 sps:$4 sm:$0xff]  }
  0xc2   :  { %1351 = vmatprep.subr.bf16.mxu0 %v3514_v1  ;;  %1480 = vmatprep.subr.bf16.mxu1 %v3517_v2  ;;  %v3601_v1 = vld [vmem:[#allocation7 + $0xac] ss:$20 sps:$4 sm:$0xff]  }
  0xc3   :  { %v3596_v2 = vld [vmem:[#allocation7 + $0xa0] ss:$20 sps:$4 sm:$0xff]  }
  0xc5   :  { %1352 = vmatpush1.bf16.msra.mxu0 %v3512_v3  ;;  %1481 = vmatpush1.bf16.msra.mxu1 %v3515_v4  ;;  %v3599_v3 = vld [vmem:[#allocation7 + $0xa8] ss:$20 sps:$4 sm:$0xff]   ;;  %v3604_v4 = vld [vmem:[#allocation7 + $0xcc] ss:$20 sps:$4 sm:$0xff]  }
  0xc6   :  { %1353 = vmatprep.subr.bf16.mxu0 %v3520_v5  ;;  %1482 = vmatprep.subr.bf16.mxu1 %v3523_v6  ;;  %v3607_v5 = vld [vmem:[#allocation7 + $0xd4] ss:$20 sps:$4 sm:$0xff]  }
  0xc7   :  { %v3602_v6 = vld [vmem:[#allocation7 + $0xc8] ss:$20 sps:$4 sm:$0xff]  }
  0xc9   :  { %1354 = vmatpush1.bf16.msra.mxu0 %v3518_v7  ;;  %1483 = vmatpush1.bf16.msra.mxu1 %v3521_v8  ;;  %v3605_v7 = vld [vmem:[#allocation7 + $0xd0] ss:$20 sps:$4 sm:$0xff]   ;;  %v3610_v8 = vld [vmem:[#allocation7 + $0xf4] ss:$20 sps:$4 sm:$0xff]  }
  0xca   :  { %1366 = vmatprep.subr.bf16.mxu0 %v3526_v11  ;;  %1495 = vmatprep.subr.bf16.mxu1 %v3529_v12  ;;  %v3611_v11 = vld [vmem:[#allocation7 + $0xf8] ss:$20 sps:$4 sm:$0xff]   ;;  %v3616_v12 = vld [vmem:[#allocation7 + $0x11c] ss:$20 sps:$4 sm:$0xff]  }
  0xcc   :  { %1356 = vmatmul.mubr.bf16.vlgmr.msra.gmra.mrb[0].mxu0 %v84_v13  ;;  %1485 = vmatmul.mubr.bf16.vlgmr.msra.gmra.mrb[0].mxu1 %v84_v13  ;;  %v3619_v13 = vld [vmem:[#allocation7 + $0x124] ss:$20 sps:$4 sm:$0xff]  }
  0xcd   :  { %1367 = vmatpush1.bf16.msra.mxu0 %v3524_v14  ;;  %1496 = vmatpush1.bf16.msra.mxu1 %v3527_v15  ;;  %v3614_v14 = vld [vmem:[#allocation7 + $0x118] ss:$20 sps:$4 sm:$0xff]   ;;  %v3617_v15 = vld [vmem:[#allocation7 + $0x120] ss:$20 sps:$4 sm:$0xff]  }
  0xce   :  { %1368 = vmatprep.subr.bf16.mxu0 %v3532_v16  ;;  %1497 = vmatprep.subr.bf16.mxu1 %v3535_v17  ;;  %v3622_v16 = vld [vmem:[#allocation7 + $0x144] ss:$20 sps:$4 sm:$0xff]   ;;  %v3625_v17 = vld [vmem:[#allocation7 + $0x14c] ss:$20 sps:$4 sm:$0xff]  }
  0xcf   :  { %1398 = vmatprep.mubr.bf16.mxu0 %v3944_v22  ;;  %1527 = vmatprep.mubr.bf16.mxu1 %v3944_v22  ;;  %v3626_v22 = vld [vmem:[#allocation7 + $0x168] ss:$20 sps:$4 sm:$0xff]  }
  0xd1   :  { %1369 = vmatpush1.bf16.msra.mxu0 %v3530_v18  ;;  %1498 = vmatpush1.bf16.msra.mxu1 %v3533_v19  ;;  %v3620_v18 = vld [vmem:[#allocation7 + $0x140] ss:$20 sps:$4 sm:$0xff]   ;;  %v3623_v19 = vld [vmem:[#allocation7 + $0x148] ss:$20 sps:$4 sm:$0xff]  }
  0xd2   :  { %1370 = vmatprep.subr.bf16.mxu0 %v3538_v20  ;;  %1499 = vmatprep.subr.bf16.mxu1 %v3541_v21  ;;  %v3628_v20 = vld [vmem:[#allocation7 + $0x16c] ss:$20 sps:$4 sm:$0xff]   ;;  %v3631_v21 = vld [vmem:[#allocation7 + $0x174] ss:$20 sps:$4 sm:$0xff]  }
  0xd5   :  { %1371 = vmatpush1.bf16.msra.mxu0 %v3536_v23  ;;  %1500 = vmatpush1.bf16.msra.mxu1 %v3539_v24  ;;  %v3629_v23 = vld [vmem:[#allocation7 + $0x170] ss:$20 sps:$4 sm:$0xff]   ;;  %v3634_v24 = vld [vmem:[#allocation7 + $0x194] ss:$20 sps:$4 sm:$0xff]  }
  0xd6   :  { %1372 = vmatprep.subr.bf16.mxu0 %v3544_v25  ;;  %1501 = vmatprep.subr.bf16.mxu1 %v3547_v26  ;;  %v3637_v25 = vld [vmem:[#allocation7 + $0x19c] ss:$20 sps:$4 sm:$0xff]  }
  0xd7   :  { %v3632_v26 = vld [vmem:[#allocation7 + $0x190] ss:$20 sps:$4 sm:$0xff]  }
  0xd9   :  { %1373 = vmatpush1.bf16.msra.mxu0 %v3542_v27  ;;  %1502 = vmatpush1.bf16.msra.mxu1 %v3545_v28  ;;  %v3635_v27 = vld [vmem:[#allocation7 + $0x198] ss:$20 sps:$4 sm:$0xff]   ;;  %v3640_v28 = vld [vmem:[#allocation7 + $0x1bc] ss:$20 sps:$4 sm:$0xff]  }
  0xda   :  { %1374 = vmatprep.subr.bf16.mxu0 %v3550_v29  ;;  %1503 = vmatprep.subr.bf16.mxu1 %v3553_v30  ;;  %v3643_v29 = vld [vmem:[#allocation7 + $0x1c4] ss:$20 sps:$4 sm:$0xff]  }
  0xdb   :  { %v3638_v30 = vld [vmem:[#allocation7 + $0x1b8] ss:$20 sps:$4 sm:$0xff]  }
  0xdd   :  { %1375 = vmatpush1.bf16.msra.mxu0 %v3548_v31  ;;  %1504 = vmatpush1.bf16.msra.mxu1 %v3551_v32  ;;  %v3641_v31 = vld [vmem:[#allocation7 + $0x1c0] ss:$20 sps:$4 sm:$0xff]   ;;  %v3646_v32 = vld [vmem:[#allocation7 + $0x1e4] ss:$20 sps:$4 sm:$0xff]  }
  0xde   :  { %1376 = vmatprep.subr.bf16.mxu0 %v3556_v33  ;;  %1505 = vmatprep.subr.bf16.mxu1 %v3559_v34  ;;  %v3649_v33 = vld [vmem:[#allocation7 + $0x1ec] ss:$20 sps:$4 sm:$0xff]  }
  0xdf   :  { %v3644_v34 = vld [vmem:[#allocation7 + $0x1e0] ss:$20 sps:$4 sm:$0xff]  }
  0xe1   :  { %1377 = vmatpush1.bf16.msra.mxu0 %v3554_v35  ;;  %1506 = vmatpush1.bf16.msra.mxu1 %v3557_v36  ;;  %v3647_v35 = vld [vmem:[#allocation7 + $0x1e8] ss:$20 sps:$4 sm:$0xff]   ;;  %v3652_v36 = vld [vmem:[#allocation7 + $0x20c] ss:$20 sps:$4 sm:$0xff]  }
  0xe2   :  { %1378 = vmatprep.subr.bf16.mxu0 %v3562_v37  ;;  %1507 = vmatprep.subr.bf16.mxu1 %v3565_v38  ;;  %v3655_v37 = vld [vmem:[#allocation7 + $0x214] ss:$20 sps:$4 sm:$0xff]  }
  0xe3   :  { %v3650_v38 = vld [vmem:[#allocation7 + $0x208] ss:$20 sps:$4 sm:$0xff]  }
  0xe5   :  { %1379 = vmatpush1.bf16.msra.mxu0 %v3560_v39  ;;  %1508 = vmatpush1.bf16.msra.mxu1 %v3563_v40  ;;  %v3653_v39 = vld [vmem:[#allocation7 + $0x210] ss:$20 sps:$4 sm:$0xff]   ;;  %v3658_v40 = vld [vmem:[#allocation7 + $0x234] ss:$20 sps:$4 sm:$0xff]  }
  0xe6   :  { %1380 = vmatprep.subr.bf16.mxu0 %v3568_v41  ;;  %1509 = vmatprep.subr.bf16.mxu1 %v3571_v42  ;;  %v3661_v41 = vld [vmem:[#allocation7 + $0x23c] ss:$20 sps:$4 sm:$0xff]  }
  0xe7   :  { %v3656_v42 = vld [vmem:[#allocation7 + $0x230] ss:$20 sps:$4 sm:$0xff]  }
  0xe9   :  { %1381 = vmatpush1.bf16.msra.mxu0 %v3566_v43  ;;  %1510 = vmatpush1.bf16.msra.mxu1 %v3569_v44  ;;  %v3659_v43 = vld [vmem:[#allocation7 + $0x238] ss:$20 sps:$4 sm:$0xff]   ;;  %v3664_v44 = vld [vmem:[#allocation7 + $0x25c] ss:$20 sps:$4 sm:$0xff]  }
  0xea   :  { %2460 = vmatprep.subr.bf16.mxu0 %v3574_v47  ;;  %2546 = vmatprep.subr.bf16.mxu1 %v3577_v48  ;;  %v3665_v47 = vld [vmem:[#allocation7 + $0x260] ss:$20 sps:$4 sm:$0xff]   ;;  %v3670_v48 = vld [vmem:[#allocation7 + $0x284] ss:$20 sps:$4 sm:$0xff]  }
  0xec   :  { %1399 = vmatmul.mubr.bf16.vlgmr.msra.gmra.mrb[0].mxu0 %v86_v51  ;;  %1528 = vmatmul.mubr.bf16.vlgmr.msra.gmra.mrb[0].mxu1 %v86_v51 }
  0xed   :  { %2461 = vmatpush1.bf16.msra.mxu0 %v3572_v49  ;;  %2547 = vmatpush1.bf16.msra.mxu1 %v3575_v50  ;;  %v3673_v49 = vld [vmem:[#allocation7 + $0x28c] ss:$20 sps:$4 sm:$0xff]   ;;  %v444_v50 = vlaneseq }
  0xee   :  { %2462 = vmatprep.subr.bf16.mxu0 %v3580_v52  ;;  %2548 = vmatprep.subr.bf16.mxu1 %v3583_v53  ;;  %v4025_v53 = vld [vmem:[#allocation8] sm:$0xff] }
  0xef   :  { %v4022_v51 = vshrl.u32 %v444_v50, 7 }
  0xf1   :  { %2463 = vmatpush1.bf16.msra.mxu0 %v3578_v54  ;;  %2549 = vmatpush1.bf16.msra.mxu1 %v3581_v55  ;;  %v446_v52 = vsub.s32 0, %v4022_v51  ;;  %v4027_v54 = vld [vmem:[#allocation8 + $0x8] sm:$0xff]  ;;  %v450_v55 = vsub.s32 4, %v4022_v51 }
  0xf2   :  { %2464 = vmatprep.subr.bf16.mxu0 %v3586_v56  ;;  %2550 = vmatprep.subr.bf16.mxu1 %v3589_v57 }
  0xf3   :  { %v447_v56 = vrot.slane %v4025_v53, %v446_v52  ;;  %v455_v57 = vrot.slane %v4027_v54, %v446_v52 }
  0xf5   :  { %2465 = vmatpush1.bf16.msra.mxu0 %v3584_v58  ;;  %2551 = vmatpush1.bf16.msra.mxu1 %v3587_v59  ;;  %v451_v58 = vrot.slane %v4025_v53, %v450_v55  ;;  %v459_v59 = vrot.slane %v4027_v54, %v450_v55 }
  0xf6   :  { %2466 = vmatprep.subr.bf16.mxu0 %v3592_v60  ;;  %2552 = vmatprep.subr.bf16.mxu1 %v3595_v61  ;;  %v467_v60 = vrot.slane %v447_v56, %v446_v52  ;;  %v475_v61 = vrot.slane %v455_v57, %v446_v52 }
  0xf9   :  { %2467 = vmatpush1.bf16.msra.mxu0 %v3590_v62  ;;  %2553 = vmatpush1.bf16.msra.mxu1 %v3593_v63  ;;  %v471_v62 = vrot.slane %v451_v58, %v446_v52  ;;  %v479_v63 = vrot.slane %v459_v59, %v446_v52 }
  0xfa   :  { %2468 = vmatprep.subr.bf16.mxu0 %v3598_v0  ;;  %2554 = vmatprep.subr.bf16.mxu1 %v3601_v1 }
  0xfd   :  { %2469 = vmatpush1.bf16.msra.mxu0 %v3596_v2  ;;  %2555 = vmatpush1.bf16.msra.mxu1 %v3599_v3 }
  0xfe   :  { %2470 = vmatprep.subr.bf16.mxu0 %v3604_v4  ;;  %2556 = vmatprep.subr.bf16.mxu1 %v3607_v5 }
 0x101   :  { %2471 = vmatpush1.bf16.msra.mxu0 %v3602_v6  ;;  %2557 = vmatpush1.bf16.msra.mxu1 %v3605_v7 }
 0x102   :  { %2472 = vmatprep.subr.bf16.mxu0 %v3610_v8  ;;  %2558 = vmatprep.subr.bf16.mxu1 %v3613_v9 }
 0x105   :  { %2473 = vmatpush1.bf16.msra.mxu0 %v3608_v10  ;;  %2559 = vmatpush1.bf16.msra.mxu1 %v3611_v11 }
 0x106   :  { %2474 = vmatprep.subr.bf16.mxu0 %v3616_v12  ;;  %2560 = vmatprep.subr.bf16.mxu1 %v3619_v13 }
 0x109   :  { %2475 = vmatpush1.bf16.msra.mxu0 %v3614_v14  ;;  %2561 = vmatpush1.bf16.msra.mxu1 %v3617_v15 }
 0x10a   :  { %2476 = vmatprep.subr.bf16.mxu0 %v3622_v16  ;;  %2562 = vmatprep.subr.bf16.mxu1 %v3625_v17 }
 0x10d   :  { %2477 = vmatpush1.bf16.msra.mxu0 %v3620_v18  ;;  %2563 = vmatpush1.bf16.msra.mxu1 %v3623_v19 }
 0x10e   :  { %2478 = vmatprep.subr.bf16.mxu0 %v3628_v20  ;;  %2564 = vmatprep.subr.bf16.mxu1 %v3631_v21 }
 0x111   :  { %2479 = vmatpush1.bf16.msra.mxu0 %v3626_v22  ;;  %2565 = vmatpush1.bf16.msra.mxu1 %v3629_v23 }
 0x112   :  { %2480 = vmatprep.subr.bf16.mxu0 %v3634_v24  ;;  %2566 = vmatprep.subr.bf16.mxu1 %v3637_v25 }
 0x115   :  { %2481 = vmatpush1.bf16.msra.mxu0 %v3632_v26  ;;  %2567 = vmatpush1.bf16.msra.mxu1 %v3635_v27 }
 0x116   :  { %2482 = vmatprep.subr.bf16.mxu0 %v3640_v28  ;;  %2568 = vmatprep.subr.bf16.mxu1 %v3643_v29 }
 0x119   :  { %2483 = vmatpush1.bf16.msra.mxu0 %v3638_v30  ;;  %2569 = vmatpush1.bf16.msra.mxu1 %v3641_v31 }
 0x11a   :  { %2484 = vmatprep.subr.bf16.mxu0 %v3646_v32  ;;  %2570 = vmatprep.subr.bf16.mxu1 %v3649_v33 }
 0x11d   :  { %2485 = vmatpush1.bf16.msra.mxu0 %v3644_v34  ;;  %2571 = vmatpush1.bf16.msra.mxu1 %v3647_v35 }
 0x11e   :  { %2486 = vmatprep.subr.bf16.mxu0 %v3652_v36  ;;  %2572 = vmatprep.subr.bf16.mxu1 %v3655_v37 }
 0x121   :  { %2487 = vmatpush1.bf16.msra.mxu0 %v3650_v38  ;;  %2573 = vmatpush1.bf16.msra.mxu1 %v3653_v39 }
 0x122   :  { %2488 = vmatprep.subr.bf16.mxu0 %v3658_v40  ;;  %2574 = vmatprep.subr.bf16.mxu1 %v3661_v41 }
 0x125   :  { %2489 = vmatpush1.bf16.msra.mxu0 %v3656_v42  ;;  %2575 = vmatpush1.bf16.msra.mxu1 %v3659_v43 }
 0x126   :  { %2490 = vmatprep.subr.bf16.mxu0 %v3664_v44  ;;  %2576 = vmatprep.subr.bf16.mxu1 %v3667_v45 }
 0x129   :  { %2491 = vmatpush1.bf16.msra.mxu0 %v3662_v46  ;;  %2577 = vmatpush1.bf16.msra.mxu1 %v3665_v47 }
 0x12a   :  { %2503 = vmatprep.subr.bf16.mxu0 %v3670_v48  ;;  %2589 = vmatprep.subr.bf16.mxu1 %v3673_v49 }
 0x1bf   :  { %v1400_v0 = vpop.f32.mrb[0].mxu0  ;;  %v1529_v1 = vpop.f32.mrb[0].mxu1 }
 0x1c0   :  { %v3280_v2 = vadd.f32 %v1400_v0, %v467_v60  ;;  %v3284_v3 = vadd.f32 %v1529_v1, %v475_v61  ;;  %v1402_v4 = vpop.f32.mrb[1].mxu0  ;;  %v1531_v5 = vpop.f32.mrb[1].mxu1  ;;  %v3676_v1 = vld [vmem:[#allocation7 + $0x2ac] ss:$20 sps:$4 sm:$0xff]  }
 0x1c1   :  { %v3281_v6 = vadd.f32 %v1402_v4, %v471_v62  ;;  %v3285_v7 = vadd.f32 %v1531_v5, %v479_v63  ;;  %v1404_v8 = vpop.f32.mrb[2].mxu0  ;;  %v1533_v9 = vpop.f32.mrb[2].mxu1  ;;  %v3677_v4 = vld [vmem:[#allocation7 + $0x2b0] ss:$20 sps:$4 sm:$0xff]   ;;  %v3682_v5 = vld [vmem:[#allocation7 + $0x2d4] ss:$20 sps:$4 sm:$0xff]  }
 0x1c2   :  { %v1546_v10 = vmul.f32 0.70710677, %v3280_v2  ;;  %v1548_v11 = vmul.f32 0.70710677, %v3284_v3  ;;  %v3282_v14 = vadd.f32 %v1404_v8, %v467_v60  ;;  %v3286_v15 = vadd.f32 %v1533_v9, %v475_v61  ;;  %v1406_v16 = vpop.f32.mrb[3].mxu0  ;;  %v1535_v17 = vpop.f32.mrb[3].mxu1 }
 0x1c3   :  { %v1547_v12 = vmul.f32 0.70710677, %v3281_v6  ;;  %v1549_v13 = vmul.f32 0.70710677, %v3285_v7  ;;  %v3283_v18 = vadd.f32 %v1406_v16, %v471_v62  ;;  %v3287_v19 = vadd.f32 %v1535_v17, %v479_v63  ;;  %v3668_v62 = vld [vmem:[#allocation7 + $0x280] ss:$20 sps:$4 sm:$0xff]  }
 0x1c4   :  { %3796 = verf.f32 %v1546_v10  ;;  %v1550_v20 = vmul.f32 0.70710677, %v3282_v14  ;;  %v1552_v21 = vmul.f32 0.70710677, %v3286_v15  ;;  %v1538_v30 = vmul.f32 0.5, %v3280_v2 }
 0x1c5   :  { %3798 = verf.f32 %v1548_v11  ;;  %v1551_v22 = vmul.f32 0.70710677, %v3283_v18  ;;  %v1553_v23 = vmul.f32 0.70710677, %v3287_v19  ;;  %v1540_v31 = vmul.f32 0.5, %v3284_v3 }
 0x1c6   :  { %3800 = verf.f32 %v1547_v12  ;;  %v1539_v34 = vmul.f32 0.5, %v3281_v6  ;;  %v1542_v36 = vmul.f32 0.5, %v3282_v14  ;;  %v1541_v39 = vmul.f32 0.5, %v3285_v7  ;;  %v3671_v63 = vld [vmem:[#allocation7 + $0x288] ss:$20 sps:$4 sm:$0xff]  }
 0x1c7   :  { %3802 = verf.f32 %v1549_v13  ;;  %v1544_v41 = vmul.f32 0.5, %v3286_v15  ;;  %v1543_v46 = vmul.f32 0.5, %v3283_v18  ;;  %v1545_v50 = vmul.f32 0.5, %v3287_v19  ;;  %v3679_v2 = vld [vmem:[#allocation7 + $0x2b4] ss:$20 sps:$4 sm:$0xff]  }
 0x1c8   :  { %3804 = verf.f32 %v1550_v20  ;;  %v3674_v3 = vld [vmem:[#allocation7 + $0x2a8] ss:$20 sps:$4 sm:$0xff]   ;;  %v3680_v7 = vld [vmem:[#allocation7 + $0x2d0] ss:$20 sps:$4 sm:$0xff]   ;;  %v3683_v8 = vld [vmem:[#allocation7 + $0x2d8] ss:$20 sps:$4 sm:$0xff]  }
 0x1c9   :  { %3806 = verf.f32 %v1552_v21  ;;  %v3685_v6 = vld [vmem:[#allocation7 + $0x2dc] ss:$20 sps:$4 sm:$0xff]   ;;  %v3691_v10 = vld [vmem:[#allocation7 + $0x304] ss:$20 sps:$4 sm:$0xff]   ;;  %v3689_v12 = vld [vmem:[#allocation7 + $0x300] ss:$20 sps:$4 sm:$0xff]  }
 0x1ca   :  { %3808 = verf.f32 %v1551_v22  ;;  %v3688_v9 = vld [vmem:[#allocation7 + $0x2fc] ss:$20 sps:$4 sm:$0xff]   ;;  %v3686_v11 = vld [vmem:[#allocation7 + $0x2f8] ss:$20 sps:$4 sm:$0xff]   ;;  %v3692_v15 = vld [vmem:[#allocation7 + $0x320] ss:$20 sps:$4 sm:$0xff]  }
 0x1cb   :  { %3810 = verf.f32 %v1553_v23  ;;  %v3694_v13 = vld [vmem:[#allocation7 + $0x324] ss:$20 sps:$4 sm:$0xff]   ;;  %v3697_v14 = vld [vmem:[#allocation7 + $0x32c] ss:$20 sps:$4 sm:$0xff]   ;;  %v3695_v16 = vld [vmem:[#allocation7 + $0x328] ss:$20 sps:$4 sm:$0xff]  }
 0x1cc   :  { %v3700_v17 = vld [vmem:[#allocation7 + $0x34c] ss:$20 sps:$4 sm:$0xff]   ;;  %v3703_v18 = vld [vmem:[#allocation7 + $0x354] ss:$20 sps:$4 sm:$0xff]   ;;  %v3701_v20 = vld [vmem:[#allocation7 + $0x350] ss:$20 sps:$4 sm:$0xff]  }
 0x1cd   :  { %v3698_v19 = vld [vmem:[#allocation7 + $0x348] ss:$20 sps:$4 sm:$0xff]   ;;  %v3704_v23 = vld [vmem:[#allocation7 + $0x370] ss:$20 sps:$4 sm:$0xff]  }
 0x1ce   :  { %v3797_v24 = vpop.eup %3796  ;;  %v3706_v21 = vld [vmem:[#allocation7 + $0x374] ss:$20 sps:$4 sm:$0xff]   ;;  %v3709_v22 = vld [vmem:[#allocation7 + $0x37c] ss:$20 sps:$4 sm:$0xff]  }
 0x1cf   :  { %v3799_v25 = vpop.eup %3798  ;;  %v1562_v28 = vadd.f32 1.0, %v3797_v24  ;;  %v3707_v24 = vld [vmem:[#allocation7 + $0x378] ss:$20 sps:$4 sm:$0xff]  }
 0x1d0   :  { %v3801_v26 = vpop.eup %3800  ;;  %v1564_v32 = vadd.f32 1.0, %v3799_v25  ;;  %v3712_v25 = vld [vmem:[#allocation7 + $0x39c] ss:$20 sps:$4 sm:$0xff]  }
 0x1d1   :  { %v3803_v27 = vpop.eup %3802  ;;  %v1563_v35 = vadd.f32 1.0, %v3801_v26  ;;  %v1570_v44 = vmul.f32 %v1562_v28, %v1538_v30  ;;  %v3715_v26 = vld [vmem:[#allocation7 + $0x3a4] ss:$20 sps:$4 sm:$0xff]   ;;  %v3713_v28 = vld [vmem:[#allocation7 + $0x3a0] ss:$20 sps:$4 sm:$0xff]  }
 0x1d2   :  { %v3805_v29 = vpop.eup %3804  ;;  %v1565_v40 = vadd.f32 1.0, %v3803_v27  ;;  %v1572_v48 = vmul.f32 %v1564_v32, %v1540_v31  ;;  %v3710_v27 = vld [vmem:[#allocation7 + $0x398] ss:$20 sps:$4 sm:$0xff]   ;;  %v3716_v31 = vld [vmem:[#allocation7 + $0x3c0] ss:$20 sps:$4 sm:$0xff]  }
 0x1d3   :  { %v3807_v33 = vpop.eup %3806  ;;  %v1566_v37 = vadd.f32 1.0, %v3805_v29  ;;  %v1571_v55 = vmul.f32 %v1563_v35, %v1539_v34  ;;  %v3718_v29 = vld [vmem:[#allocation7 + $0x3c4] ss:$20 sps:$4 sm:$0xff]   ;;  %v3721_v30 = vld [vmem:[#allocation7 + $0x3cc] ss:$20 sps:$4 sm:$0xff]  }
 0x1d4   :  { %v3809_v38 = vpop.eup %3808  ;;  %v1568_v42 = vadd.f32 1.0, %v3807_v33  ;;  %v1573_v58 = vmul.f32 %v1565_v40, %v1541_v39  ;;  %v3719_v32 = vld [vmem:[#allocation7 + $0x3c8] ss:$20 sps:$4 sm:$0xff]   ;;  %v3724_v33 = vld [vmem:[#allocation7 + $0x3ec] ss:$20 sps:$4 sm:$0xff]  }
 0x1d5   :  { %v3811_v43 = vpop.eup %3810  ;;  %v1574_v45 = vmul.f32 %v1566_v37, %v1542_v36  ;;  %v1567_v47 = vadd.f32 1.0, %v3809_v38  ;;  %v3727_v34 = vld [vmem:[#allocation7 + $0x3f4] ss:$20 sps:$4 sm:$0xff]   ;;  %v3725_v36 = vld [vmem:[#allocation7 + $0x3f0] ss:$20 sps:$4 sm:$0xff]  }
 0x1d6   :  { %v1576_v49 = vmul.f32 %v1568_v42, %v1544_v41  ;;  %v1569_v52 = vadd.f32 1.0, %v3811_v43  ;;  %v3722_v35 = vld [vmem:[#allocation7 + $0x3e8] ss:$20 sps:$4 sm:$0xff]   ;;  %v3728_v39 = vld [vmem:[#allocation7 + $0x410] ss:$20 sps:$4 sm:$0xff]  }
 0x1d7   :  { %v4034_v56 = vpack.c.bf16 %v1574_v45, %v1570_v44  ;;  %v1575_v57 = vmul.f32 %v1567_v47, %v1543_v46  ;;  %v3730_v37 = vld [vmem:[#allocation7 + $0x414] ss:$20 sps:$4 sm:$0xff]   ;;  %v3733_v38 = vld [vmem:[#allocation7 + $0x41c] ss:$20 sps:$4 sm:$0xff]   ;;  %v3731_v40 = vld [vmem:[#allocation7 + $0x418] ss:$20 sps:$4 sm:$0xff]  }
 0x1d8   :  { %v4036_v59 = vpack.c.bf16 %v1576_v49, %v1572_v48  ;;  %v1577_v60 = vmul.f32 %v1569_v52, %v1545_v50  ;;  %v3736_v41 = vld [vmem:[#allocation7 + $0x43c] ss:$20 sps:$4 sm:$0xff]   ;;  %v3739_v42 = vld [vmem:[#allocation7 + $0x444] ss:$20 sps:$4 sm:$0xff]   ;;  %v3737_v44 = vld [vmem:[#allocation7 + $0x440] ss:$20 sps:$4 sm:$0xff]  }
 0x1d9   :  { %v4038_v61 = vpack.c.bf16 %v1575_v57, %v1571_v55  ;;  %v3734_v43 = vld [vmem:[#allocation7 + $0x438] ss:$20 sps:$4 sm:$0xff]   ;;  %v3740_v47 = vld [vmem:[#allocation7 + $0x460] ss:$20 sps:$4 sm:$0xff]   ;;  %v3743_v48 = vld [vmem:[#allocation7 + $0x468] ss:$20 sps:$4 sm:$0xff]  }
 0x1da   :  { %v4040_v0 = vpack.c.bf16 %v1577_v60, %v1573_v58  ;;  %v3742_v45 = vld [vmem:[#allocation7 + $0x464] ss:$20 sps:$4 sm:$0xff]   ;;  %v3745_v46 = vld [vmem:[#allocation7 + $0x46c] ss:$20 sps:$4 sm:$0xff]   ;;  %v3751_v50 = vld [vmem:[#allocation7 + $0x494] ss:$20 sps:$4 sm:$0xff]  }
 0x1db   :  { %2492 = vmatprep.mubr.bf16.mxu0 %v4038_v61  ;;  %2578 = vmatprep.mubr.bf16.mxu1 %v4038_v61  ;;  %v3748_v49 = vld [vmem:[#allocation7 + $0x48c] ss:$20 sps:$4 sm:$0xff]   ;;  %v3746_v52 = vld [vmem:[#allocation7 + $0x488] ss:$20 sps:$4 sm:$0xff]   ;;  %v3749_v55 = vld [vmem:[#allocation7 + $0x490] ss:$20 sps:$4 sm:$0xff]  }
 0x1dc   :  { %2493 = vmatmul.mubr.bf16.vlgmr.msra.gmra.mrb[4].mxu0 %v4034_v56  ;;  %2579 = vmatmul.mubr.bf16.vlgmr.msra.gmra.mrb[4].mxu1 %v4034_v56  ;;  %v3754_v57 = vld [vmem:[#allocation7 + $0x4b4] ss:$20 sps:$4 sm:$0xff]   ;;  %v3757_v58 = vld [vmem:[#allocation7 + $0x4bc] ss:$20 sps:$4 sm:$0xff]  }
 0x1dd   :  { %2504 = vmatpush1.bf16.msra.mxu0 %v3668_v62  ;;  %2590 = vmatpush1.bf16.msra.mxu1 %v3671_v63  ;;  %v3752_v60 = vld [vmem:[#allocation7 + $0x4b0] ss:$20 sps:$4 sm:$0xff]   ;;  %v3755_v62 = vld [vmem:[#allocation7 + $0x4b8] ss:$20 sps:$4 sm:$0xff]  }
 0x1de   :  { %2535 = vmatprep.mubr.bf16.mxu0 %v4040_v0  ;;  %2621 = vmatprep.mubr.bf16.mxu1 %v4040_v0  ;;  %v3760_v63 = vld [vmem:[#allocation7 + $0x4dc] ss:$20 sps:$4 sm:$0xff]  }
 0x1df   :  { %2505 = vmatprep.subr.bf16.mxu0 %v3676_v1  ;;  %2591 = vmatprep.subr.bf16.mxu1 %v3679_v2  ;;  %v3763_v1 = vld [vmem:[#allocation7 + $0x4e4] ss:$20 sps:$4 sm:$0xff]  }
 0x1e0   :  { %v3758_v2 = vld [vmem:[#allocation7 + $0x4d8] ss:$20 sps:$4 sm:$0xff]  }
 0x1e1   :  { %2506 = vmatpush1.bf16.msra.mxu0 %v3674_v3  ;;  %2592 = vmatpush1.bf16.msra.mxu1 %v3677_v4  ;;  %v3761_v3 = vld [vmem:[#allocation7 + $0x4e0] ss:$20 sps:$4 sm:$0xff]   ;;  %v3764_v4 = vld [vmem:[#allocation7 + $0x150] ss:$20 sps:$4 sm:$0xff]  }
 0x1e2   :  { %2507 = vmatprep.subr.bf16.mxu0 %v3682_v5  ;;  %2593 = vmatprep.subr.bf16.mxu1 %v3685_v6  ;;  %v3765_v5 = vld [vmem:[#allocation7 + $0x3d0] ss:$20 sps:$4 sm:$0xff]  }
 0x1e3   :  { %v3766_v6 = vld [vmem:[#allocation7 + $0x10] ss:$20 sps:$4 sm:$0xff]  }
 0x1e5   :  { %2508 = vmatpush1.bf16.msra.mxu0 %v3680_v7  ;;  %2594 = vmatpush1.bf16.msra.mxu1 %v3683_v8  ;;  %v3767_v7 = vld [vmem:[#allocation7 + $0x290] ss:$20 sps:$4 sm:$0xff]   ;;  %v3768_v8 = vld [vmem:[#allocation7 + $0x178] ss:$20 sps:$4 sm:$0xff]  }
 0x1e6   :  { %2509 = vmatprep.subr.bf16.mxu0 %v3688_v9  ;;  %2595 = vmatprep.subr.bf16.mxu1 %v3691_v10  ;;  %v3769_v9 = vld [vmem:[#allocation7 + $0x3f8] ss:$20 sps:$4 sm:$0xff]  }
 0x1e7   :  { %v3770_v10 = vld [vmem:[#allocation7 + $0x38] ss:$20 sps:$4 sm:$0xff]  }
 0x1e9   :  { %2510 = vmatpush1.bf16.msra.mxu0 %v3686_v11  ;;  %2596 = vmatpush1.bf16.msra.mxu1 %v3689_v12  ;;  %v3771_v11 = vld [vmem:[#allocation7 + $0x2b8] ss:$20 sps:$4 sm:$0xff]   ;;  %v3772_v12 = vld [vmem:[#allocation7 + $0x1a0] ss:$20 sps:$4 sm:$0xff]  }
 0x1ea   :  { %2511 = vmatprep.subr.bf16.mxu0 %v3694_v13  ;;  %2597 = vmatprep.subr.bf16.mxu1 %v3697_v14  ;;  %v3773_v13 = vld [vmem:[#allocation7 + $0x420] ss:$20 sps:$4 sm:$0xff]  }
 0x1eb   :  { %v3774_v14 = vld [vmem:[#allocation7 + $0x60] ss:$20 sps:$4 sm:$0xff]  }
 0x1ed   :  { %2512 = vmatpush1.bf16.msra.mxu0 %v3692_v15  ;;  %2598 = vmatpush1.bf16.msra.mxu1 %v3695_v16  ;;  %v3775_v15 = vld [vmem:[#allocation7 + $0x2e0] ss:$20 sps:$4 sm:$0xff]   ;;  %v3776_v16 = vld [vmem:[#allocation7 + $0x1c8] ss:$20 sps:$4 sm:$0xff]  }
 0x1ee   :  { %2513 = vmatprep.subr.bf16.mxu0 %v3700_v17  ;;  %2599 = vmatprep.subr.bf16.mxu1 %v3703_v18  ;;  %v3777_v17 = vld [vmem:[#allocation7 + $0x448] ss:$20 sps:$4 sm:$0xff]  }
 0x1ef   :  { %v3778_v18 = vld [vmem:[#allocation7 + $0x88] ss:$20 sps:$4 sm:$0xff]  }
 0x1f1   :  { %2514 = vmatpush1.bf16.msra.mxu0 %v3698_v19  ;;  %2600 = vmatpush1.bf16.msra.mxu1 %v3701_v20  ;;  %v3780_v19 = vld [vmem:[#allocation7 + $0x1f0] ss:$20 sps:$4 sm:$0xff]  }
 0x1f2   :  { %2515 = vmatprep.subr.bf16.mxu0 %v3706_v21  ;;  %2601 = vmatprep.subr.bf16.mxu1 %v3709_v22  ;;  %v3782_v20 = vld [vmem:[#allocation7 + $0xb0] ss:$20 sps:$4 sm:$0xff]   ;;  %v3784_v22 = vld [vmem:[#allocation7 + $0x218] ss:$20 sps:$4 sm:$0xff]  }
 0x1f3   :  { %v3783_v21 = vld [vmem:[#allocation7 + $0x330] ss:$20 sps:$4 sm:$0xff]  }
 0x1f5   :  { %2516 = vmatpush1.bf16.msra.mxu0 %v3704_v23  ;;  %2602 = vmatpush1.bf16.msra.mxu1 %v3707_v24  ;;  %v3785_v23 = vld [vmem:[#allocation7 + $0x498] ss:$20 sps:$4 sm:$0xff]  }
 0x1f6   :  { %2517 = vmatprep.subr.bf16.mxu0 %v3712_v25  ;;  %2603 = vmatprep.subr.bf16.mxu1 %v3715_v26  ;;  %v3786_v24 = vld [vmem:[#allocation7 + $0xd8] ss:$20 sps:$4 sm:$0xff]   ;;  %v3788_v26 = vld [vmem:[#allocation7 + $0x240] ss:$20 sps:$4 sm:$0xff]  }
 0x1f7   :  { %v3787_v25 = vld [vmem:[#allocation7 + $0x358] ss:$20 sps:$4 sm:$0xff]  }
 0x1f9   :  { %2518 = vmatpush1.bf16.msra.mxu0 %v3710_v27  ;;  %2604 = vmatpush1.bf16.msra.mxu1 %v3713_v28  ;;  %v3789_v27 = vld [vmem:[#allocation7 + $0x4c0] ss:$20 sps:$4 sm:$0xff]  }
 0x1fa   :  { %2519 = vmatprep.subr.bf16.mxu0 %v3718_v29  ;;  %2605 = vmatprep.subr.bf16.mxu1 %v3721_v30  ;;  %v3790_v28 = vld [vmem:[#allocation7 + $0x100] ss:$20 sps:$4 sm:$0xff]   ;;  %v3792_v30 = vld [vmem:[#allocation7 + $0x268] ss:$20 sps:$4 sm:$0xff]  }
 0x1fb   :  { %v3791_v29 = vld [vmem:[#allocation7 + $0x380] ss:$20 sps:$4 sm:$0xff]  }
 0x1fd   :  { %2520 = vmatpush1.bf16.msra.mxu0 %v3716_v31  ;;  %2606 = vmatpush1.bf16.msra.mxu1 %v3719_v32  ;;  %v3793_v31 = vld [vmem:[#allocation7 + $0x4e8] ss:$20 sps:$4 sm:$0xff]  }
 0x1fe   :  { %2521 = vmatprep.subr.bf16.mxu0 %v3724_v33  ;;  %2607 = vmatprep.subr.bf16.mxu1 %v3727_v34  ;;  %v3794_v32 = vld [vmem:[#allocation7 + $0x128] ss:$20 sps:$4 sm:$0xff]  }
 0x1ff   :  { %v3795_v33 = vld [vmem:[#allocation7 + $0x3a8] ss:$20 sps:$4 sm:$0xff]  }
 0x201   :  { %2522 = vmatpush1.bf16.msra.mxu0 %v3722_v35  ;;  %2608 = vmatpush1.bf16.msra.mxu1 %v3725_v36 }
 0x202   :  { %2523 = vmatprep.subr.bf16.mxu0 %v3730_v37  ;;  %2609 = vmatprep.subr.bf16.mxu1 %v3733_v38 }
 0x205   :  { %2524 = vmatpush1.bf16.msra.mxu0 %v3728_v39  ;;  %2610 = vmatpush1.bf16.msra.mxu1 %v3731_v40 }
 0x206   :  { %2525 = vmatprep.subr.bf16.mxu0 %v3736_v41  ;;  %2611 = vmatprep.subr.bf16.mxu1 %v3739_v42  ;;  %v1585_v42 = vsub.s32 1, %v4022_v51 }
 0x209   :  { %2526 = vmatpush1.bf16.msra.mxu0 %v3734_v43  ;;  %2612 = vmatpush1.bf16.msra.mxu1 %v3737_v44  ;;  %v1589_v43 = vsub.s32 5, %v4022_v51  ;;  %v1586_v44 = vrot.slane %v4025_v53, %v1585_v42 }
 0x20a   :  { %2527 = vmatprep.subr.bf16.mxu0 %v3742_v45  ;;  %2613 = vmatprep.subr.bf16.mxu1 %v3745_v46 }
 0x20b   :  { %v1590_v45 = vrot.slane %v4025_v53, %v1589_v43  ;;  %v1611_v46 = vrot.slane %v1586_v44, %v1585_v42 }
 0x20d   :  { %2528 = vmatpush1.bf16.msra.mxu0 %v3740_v47  ;;  %2614 = vmatpush1.bf16.msra.mxu1 %v3743_v48  ;;  %v4059_v47 = vld [vmem:[#allocation8 + $0x10] sm:$0xf] }
 0x20e   :  { %2529 = vmatprep.subr.bf16.mxu0 %v3748_v49  ;;  %2615 = vmatprep.subr.bf16.mxu1 %v3751_v50 }
 0x211   :  { %2530 = vmatpush1.bf16.msra.mxu0 %v3746_v52  ;;  %2616 = vmatpush1.bf16.msra.mxu1 %v3749_v55  ;;  %v1598_v52 = vrot.slane %v4027_v54, %v1589_v43  ;;  %v1602_v55 = vrot.slane %v4059_v47, %v1585_v42 }
 0x212   :  { %2531 = vmatprep.subr.bf16.mxu0 %v3754_v57  ;;  %2617 = vmatprep.subr.bf16.mxu1 %v3757_v58 }
 0x215   :  { %2532 = vmatpush1.bf16.msra.mxu0 %v3752_v60  ;;  %2618 = vmatpush1.bf16.msra.mxu1 %v3755_v62 }
 0x216   :  { %2533 = vmatprep.subr.bf16.mxu0 %v3760_v63  ;;  %2619 = vmatprep.subr.bf16.mxu1 %v3763_v1  ;;  %v1623_v63 = vrot.slane %v1598_v52, %v1585_v42 }
 0x219   :  { %2534 = vmatpush1.bf16.msra.mxu0 %v3758_v2  ;;  %2620 = vmatpush1.bf16.msra.mxu1 %v3761_v3  ;;  %v1627_v2 = vrot.slane %v1602_v55, %v1585_v42 }
 0x21a   :  { %3236 = vmatprep.subr.bf16.mxu0 %v3764_v4  ;;  %3258 = vmatprep.subr.bf16.mxu1 %v3765_v5 }
 0x21c   :  { %2536 = vmatmul.mubr.bf16.vlgmr.msra.gmra.mrb[4].mxu0 %v4036_v59  ;;  %2622 = vmatmul.mubr.bf16.vlgmr.msra.gmra.mrb[4].mxu1 %v4036_v59 }
 0x21d   :  { %3237 = vmatpush3.bf16.msra.mxu0 %v3766_v6  ;;  %2664 = vmatprep.mubr.bf16.mxu0 %v4038_v61  ;;  %v3779_v61 = vld [vmem:[#allocation7 + $0x308] ss:$20 sps:$4 sm:$0xff]  }
 0x21e   :  { %3259 = vmatpush3.bf16.msra.mxu1 %v3767_v7  ;;  %2705 = vmatprep.mubr.bf16.mxu1 %v4040_v0  ;;  %v3781_v0 = vld [vmem:[#allocation7 + $0x470] ss:$20 sps:$4 sm:$0xff]  }
 0x21f   :  { %3238 = vmatprep.subr.bf16.mxu0 %v3768_v8  ;;  %3260 = vmatprep.subr.bf16.mxu1 %v3769_v9 }
 0x221   :  { %3239 = vmatpush3.bf16.msra.mxu0 %v3770_v10 }
 0x222   :  { %3261 = vmatpush3.bf16.msra.mxu1 %v3771_v11  ;;  %3240 = vmatprep.subr.bf16.mxu0 %v3772_v12 }
 0x223   :  { %3262 = vmatprep.subr.bf16.mxu1 %v3773_v13 }
 0x225   :  { %3241 = vmatpush3.bf16.msra.mxu0 %v3774_v14 }
 0x226   :  { %3263 = vmatpush3.bf16.msra.mxu1 %v3775_v15  ;;  %3242 = vmatprep.subr.bf16.mxu0 %v3776_v16 }
 0x227   :  { %3264 = vmatprep.subr.bf16.mxu1 %v3777_v17 }
 0x229   :  { %3243 = vmatpush3.bf16.msra.mxu0 %v3778_v18 }
 0x22a   :  { %3265 = vmatpush3.bf16.msra.mxu1 %v3779_v61  ;;  %3244 = vmatprep.subr.bf16.mxu0 %v3780_v19 }
 0x22b   :  { %3266 = vmatprep.subr.bf16.mxu1 %v3781_v0 }
 0x22d   :  { %3245 = vmatpush3.bf16.msra.mxu0 %v3782_v20 }
 0x22e   :  { %3267 = vmatpush3.bf16.msra.mxu1 %v3783_v21  ;;  %3246 = vmatprep.subr.bf16.mxu0 %v3784_v22 }
 0x22f   :  { %3268 = vmatprep.subr.bf16.mxu1 %v3785_v23 }
 0x231   :  { %3247 = vmatpush3.bf16.msra.mxu0 %v3786_v24 }
 0x232   :  { %3269 = vmatpush3.bf16.msra.mxu1 %v3787_v25  ;;  %3248 = vmatprep.subr.bf16.mxu0 %v3788_v26 }
 0x233   :  { %3270 = vmatprep.subr.bf16.mxu1 %v3789_v27 }
 0x235   :  { %3249 = vmatpush3.bf16.msra.mxu0 %v3790_v28 }
 0x236   :  { %3271 = vmatpush3.bf16.msra.mxu1 %v3791_v29  ;;  %3250 = vmatprep.subr.bf16.mxu0 %v3792_v30 }
 0x237   :  { %3272 = vmatprep.subr.bf16.mxu1 %v3793_v31 }
 0x239   :  { %3251 = vmatpush3.bf16.msra.mxu0 %v3794_v32 }
 0x23a   :  { %3273 = vmatpush3.bf16.msra.mxu1 %v3795_v33 }
 0x23c   :  { %2665 = vmatmul.mubr.bf16.vlgmr.msra.gmra.mrb[8].mxu0 %v4034_v56  ;;  %v1615_v56 = vrot.slane %v1590_v45, %v1585_v42 }
 0x23d   :  { %2706 = vmatmul.mubr.bf16.vlgmr.msra.gmra.mrb[8].mxu1 %v4036_v59  ;;  %v1594_v59 = vrot.slane %v4027_v54, %v1585_v42 }
 0x23f   :  { %v1619_v50 = vrot.slane %v1594_v59, %v1585_v42 }
 0x2ef   :  { %v2537_v34 = vpop.f32.mrb[4].mxu0  ;;  %v2623_v35 = vpop.f32.mrb[4].mxu1 }
 0x2f0   :  { %v2539_v36 = vpop.f32.mrb[5].mxu0  ;;  %v2625_v37 = vpop.f32.mrb[5].mxu1  ;;  %v3288_v48 = vadd.f32 %v2537_v34, %v1611_v46  ;;  %v3292_v62 = vadd.f32 %v2623_v35, %v1619_v50 }
 0x2f1   :  { %v2541_v38 = vpop.f32.mrb[6].mxu0  ;;  %v2627_v39 = vpop.f32.mrb[6].mxu1  ;;  %v3289_v49 = vadd.f32 %v2539_v36, %v1615_v56  ;;  %v3293_v13 = vadd.f32 %v2625_v37, %v1623_v63 }
 0x2f2   :  { %v2543_v40 = vpop.f32.mrb[7].mxu0  ;;  %v2629_v41 = vpop.f32.mrb[7].mxu1  ;;  %v3290_v58 = vadd.f32 %v2541_v38, %v1611_v46  ;;  %v3294_v14 = vadd.f32 %v2627_v39, %v1619_v50 }
 0x2f3   :  { %v2714_v57 = vadd.f32 %v3289_v49, %v3288_v48  ;;  %v3291_v60 = vadd.f32 %v2543_v40, %v1615_v56  ;;  %v3295_v21 = vadd.f32 %v2629_v41, %v1623_v63 }
 0x2f5   :  { %v2720_v5 = vadd.f32 %v3291_v60, %v3290_v58  ;;  %v2715_v9 = vadd.f32 %v3292_v62, %v2714_v57 }
 0x2f7   :  { %v2721_v61 = vadd.f32 %v3294_v14, %v2720_v5  ;;  %v2716_v20 = vadd.f32 %v3293_v13, %v2715_v9  ;;  %v2779_v5 = vsub.s32 2, %v4022_v51  ;;  %v2838_v9 = vsub.s32 7, %v4022_v51 }
 0x2f9   :  { %v2722_v24 = vadd.f32 %v3295_v21, %v2721_v61 }
 0x30f   :  { %v3252_v1 = vpop.f32.mrb[8].mxu0 }
 0x310   :  { %v3274_v3 = vpop.f32.mrb[8].mxu1  ;;  %v3253_v4 = vpop.f32.mrb[9].mxu0 }
 0x311   :  { %v3254_v6 = vadd.f32 %v3253_v4, %v3252_v1  ;;  %v3275_v7 = vpop.f32.mrb[9].mxu1  ;;  %v3255_v8 = vpop.f32.mrb[10].mxu0 }
 0x312   :  { %v3276_v10 = vadd.f32 %v3275_v7, %v3274_v3  ;;  %v3277_v11 = vpop.f32.mrb[10].mxu1  ;;  %v3256_v12 = vpop.f32.mrb[11].mxu0 }
 0x313   :  { %v2667_v15 = vadd.f32 %v3254_v6, %v1627_v2  ;;  %v3257_v16 = vadd.f32 %v3256_v12, %v3255_v8  ;;  %v3278_v17 = vpop.f32.mrb[11].mxu1  ;;  %v2783_v6 = vsub.s32 6, %v4022_v51  ;;  %v2834_v8 = vsub.s32 3, %v4022_v51 }
 0x314   :  { %v3279_v18 = vadd.f32 %v3278_v17, %v3277_v11  ;;  %v2788_v12 = vrot.slane %v4027_v54, %v2779_v5 }
 0x315   :  { %v2670_v19 = vadd.f32 %v3257_v16, %v1627_v2  ;;  %v2708_v0 = vadd.f32 %v3276_v10, %v2667_v15  ;;  %v2780_v10 = vrot.slane %v4025_v53, %v2779_v5  ;;  %v2784_v11 = vrot.slane %v4025_v53, %v2783_v6 }
 0x316   :  { %v2835_v15 = vrot.slane %v4025_v53, %v2834_v8  ;;  %v2839_v16 = vrot.slane %v4025_v53, %v2838_v9  ;;  %v2843_v17 = vrot.slane %v4027_v54, %v2834_v8  ;;  %v2813_v51 = vrot.slane %v2788_v12, %v2779_v5 }
 0x317   :  { %v2711_v22 = vadd.f32 %v3279_v18, %v2670_v19  ;;  %v2717_v23 = vadd.f32 %v2716_v20, %v2708_v0  ;;  %v2805_v18 = vrot.slane %v2780_v10, %v2779_v5  ;;  %v2809_v61 = vrot.slane %v2784_v11, %v2779_v5 }
 0x318   :  { %v2847_v20 = vrot.slane %v4027_v54, %v2838_v9 }
 0x319   :  { %2718 = vadd.xlane.f32.xlu0 %v2717_v23  ;;  %v2723_v25 = vadd.f32 %v2722_v24, %v2711_v22 }
 0x31d   :  { %2724 = vadd.xlane.f32.xlu0 %v2723_v25 }
 0x3a6   :  { %v2719_v26 = vpop.xlane.xlu0 %2718 }
 0x3a7   :  { %v2727_v27 = vmul.f32 0.0015625, %v2719_v26 }
 0x3a9   :  { %v2729_v28 = vsub.f32 %v3288_v48, %v2727_v27  ;;  %v2730_v29 = vsub.f32 %v3289_v49, %v2727_v27  ;;  %v2731_v30 = vsub.f32 %v3292_v62, %v2727_v27  ;;  %v2732_v32 = vsub.f32 %v3293_v13, %v2727_v27 }
 0x3aa   :  { %v2725_v31 = vpop.xlane.xlu0 %2724  ;;  %v2733_v36 = vsub.f32 %v2708_v0, %v2727_v27  ;;  %v2792_v13 = vrot.slane %v4027_v54, %v2783_v6  ;;  %v2860_v27 = vrot.slane %v2835_v15, %v2834_v8 }
 0x3ab   :  { %v2728_v33 = vmul.f32 0.0015625, %v2725_v31  ;;  %v2739_v34 = vmul.f32 %v2729_v28, %v2729_v28  ;;  %v2740_v35 = vmul.f32 %v2730_v29, %v2730_v29  ;;  %v2741_v37 = vmul.f32 %v2731_v30, %v2731_v30 }
 0x3ac   :  { %v2742_v42 = vmul.f32 %v2732_v32, %v2732_v32  ;;  %v2743_v56 = vmul.f32 %v2733_v36, %v2733_v36  ;;  %v2817_v0 = vrot.slane %v2792_v13, %v2779_v5  ;;  %v2864_v31 = vrot.slane %v2839_v16, %v2834_v8 }
 0x3ad   :  { %v2749_v38 = vadd.f32 %v2740_v35, %v2739_v34  ;;  %v4063_v39 = vsub.f32 %v3290_v58, %v2728_v33  ;;  %v4065_v40 = vsub.f32 %v3291_v60, %v2728_v33  ;;  %v4067_v41 = vsub.f32 %v3294_v14, %v2728_v33 }
 0x3ae   :  { %v4069_v44 = vsub.f32 %v3295_v21, %v2728_v33  ;;  %v2738_v48 = vsub.f32 %v2711_v22, %v2728_v33  ;;  %v2796_v14 = vrot.slane %v4059_v47, %v2779_v5  ;;  %v2851_v22 = vrot.slane %v4059_v47, %v2834_v8 }
 0x3af   :  { %v2750_v43 = vadd.f32 %v2749_v38, %v2741_v37  ;;  %v2744_v45 = vmul.f32 %v4063_v39, %v4063_v39  ;;  %v2745_v46 = vmul.f32 %v4065_v40, %v4065_v40  ;;  %v2746_v49 = vmul.f32 %v4067_v41, %v4067_v41 }
 0x3b0   :  { %v2747_v55 = vmul.f32 %v4069_v44, %v4069_v44  ;;  %v2748_v58 = vmul.f32 %v2738_v48, %v2738_v48  ;;  %v2821_v21 = vrot.slane %v2796_v14, %v2779_v5  ;;  %v2868_v33 = vrot.slane %v2843_v17, %v2834_v8 }
 0x3b1   :  { %v2751_v59 = vadd.f32 %v2750_v43, %v2742_v42  ;;  %v2755_v50 = vadd.f32 %v2745_v46, %v2744_v45  ;;  %v2872_v42 = vrot.slane %v2847_v20, %v2834_v8  ;;  %v2876_v43 = vrot.slane %v2851_v22, %v2834_v8 }
 0x3b3   :  { %v2752_v52 = vadd.f32 %v2751_v59, %v2743_v56  ;;  %v2756_v57 = vadd.f32 %v2755_v50, %v2746_v49 }
 0x3b5   :  { %2753 = vadd.xlane.f32.xlu1 %v2752_v52  ;;  %v2757_v60 = vadd.f32 %v2756_v57, %v2747_v55 }
 0x3b7   :  { %v2758_v62 = vadd.f32 %v2757_v60, %v2748_v58 }
 0x3b9   :  { %2759 = vadd.xlane.f32.xlu1 %v2758_v62 }
 0x442   :  { %v2754_v63 = vpop.xlane.xlu1 %2753 }
 0x443   :  { %v2761_v1 = vmul.f32 0.0015625, %v2754_v63 }
 0x445   :  { %v2763_v2 = vadd.f32 1e-05, %v2761_v1 }
 0x446   :  { %v2760_v3 = vpop.xlane.xlu1 %2759 }
 0x447   :  { %3812 = vrsqrt.f32 %v2763_v2  ;;  %v2762_v4 = vmul.f32 0.0015625, %v2760_v3 }
 0x449   :  { %v2764_v7 = vadd.f32 1e-05, %v2762_v4 }
 0x44b   :  { %3814 = vrsqrt.f32 %v2764_v7 }
 0x451   :  { %v3813_v19 = vpop.eup %3812 }
 0x452   :  { %v2767_v23 = vmul.f32 %v3813_v19, %v2729_v28  ;;  %v2768_v24 = vmul.f32 %v3813_v19, %v2730_v29  ;;  %v2769_v25 = vmul.f32 %v3813_v19, %v2731_v30  ;;  %v2770_v26 = vmul.f32 %v3813_v19, %v2732_v32 }
 0x453   :  { %v2771_v53 = vmul.f32 %v3813_v19, %v2733_v36 }
 0x454   :  { %v2822_v34 = vmul.f32 %v2805_v18, %v2767_v23  ;;  %v2823_v35 = vmul.f32 %v2809_v61, %v2768_v24  ;;  %v2824_v37 = vmul.f32 %v2813_v51, %v2769_v25  ;;  %v2825_v45 = vmul.f32 %v2817_v0, %v2770_v26 }
 0x455   :  { %v3815_v38 = vpop.eup %3814  ;;  %v2826_v46 = vmul.f32 %v2821_v21, %v2771_v53 }
 0x456   :  { %v2772_v54 = vmul.f32 %v3815_v38, %v4063_v39  ;;  %v2773_v47 = vmul.f32 %v3815_v38, %v4065_v40  ;;  %v2774_v28 = vmul.f32 %v3815_v38, %v4067_v41  ;;  %v2775_v29 = vmul.f32 %v3815_v38, %v4069_v44 }
 0x457   :  { %v2776_v30 = vmul.f32 %v3815_v38, %v2738_v48  ;;  %v2877_v32 = vadd.f32 %v2860_v27, %v2822_v34  ;;  %v2878_v56 = vadd.f32 %v2864_v31, %v2823_v35  ;;  %v2879_v36 = vadd.f32 %v2868_v33, %v2824_v37 }
 0x458   :  { %v2827_v59 = vmul.f32 %v2805_v18, %v2772_v54  ;;  %v2828_v49 = vmul.f32 %v2809_v61, %v2773_v47  ;;  %v2829_v50 = vmul.f32 %v2813_v51, %v2774_v28  ;;  %v2830_v52 = vmul.f32 %v2817_v0, %v2775_v29 }
 0x459   :  { %v2831_v55 = vmul.f32 %v2821_v21, %v2776_v30  ;;  %v2880_v57 = vadd.f32 %v2872_v42, %v2825_v45  ;;  %v2881_v58 = vadd.f32 %v2876_v43, %v2826_v46  ;;  %2887 = vst [vmem:[#allocation10] sm:$0xff] %v2877_v32  ;;  %2888 = vst [vmem:[#allocation10 + $0x8] sm:$0xff] %v2878_v56 }
 0x45a   :  { %2889 = vst [vmem:[#allocation10 + $0x10] sm:$0xff] %v2879_v36  ;;  %v2882_v39 = vadd.f32 %v2860_v27, %v2827_v59  ;;  %v2883_v40 = vadd.f32 %v2864_v31, %v2828_v49  ;;  %v2884_v41 = vadd.f32 %v2868_v33, %v2829_v50  ;;  %v2885_v44 = vadd.f32 %v2872_v42, %v2830_v52 }
 0x45b   :  { %v2886_v48 = vadd.f32 %v2876_v43, %v2831_v55  ;;  %2890 = vst [vmem:[#allocation10 + $0x18] sm:$0xff] %v2880_v57  ;;  %2891 = vst [vmem:[#allocation10 + $0x20] sm:$0xff] %v2881_v58 }
 0x45c   :  { %2892 = vst [vmem:[#allocation10 + $0x28] sm:$0xff] %v2882_v39  ;;  %2893 = vst [vmem:[#allocation10 + $0x30] sm:$0xff] %v2883_v40 }
 0x45d   :  { %2894 = vst [vmem:[#allocation10 + $0x38] sm:$0xff] %v2884_v41  ;;  %2895 = vst [vmem:[#allocation10 + $0x40] sm:$0xff] %v2885_v44 }
 0x45e   :  { %2896 = vst [vmem:[#allocation10 + $0x48] sm:$0xff] %v2886_v48 }
 0x45f   :  { %3915 = shalt.err (!%p3912_p8)
}
 0x460   :  { %s3916_s19 = scalar_lea.hbm %s4116_s4, 1280 }
 0x461   :  { %p3917_p9 = scmp.ne.s32.totalorder %s4116_s4, %s3916_s19  ;;  %p3920_p10 = scmp.lt.u32.totalorder %s3916_s19, %s4116_s4 }
 0x463   :  { %p3922_p11 = pnand %p3920_p10, %p3917_p9 }
 0x465   :  { %3925 = shalt.err (!%p3922_p11)
}
 0x466   :  { %2908 = dma.vmem_to_hbm [thread:$0]  %s2903_s15, 1280, %s4116_s4, [#allocation4], %s3938_s1, %s3938_s1, %s3939_s13  }
 0x467   :  { %3932 = dma.done.wait [#allocation4], 1280  }
 0x468   :  { %3933 = vsyncadd [#allocation4], 4294966016 }
 0x469   :  { %2912 = vsyncpa [#allocation3], 1 }
 0x46a   :  { %2913 = vsyncpa [#allocation6], 1 }
 0x46b   :  { %2914 = vsyncpa [#allocation9], 1 }
 0x46c   :  { %2915 = vsyncpa [#allocation4], 1 }

</bundles_post_ra>
